<compile_context>
chip_gen: v6e
topology: v6e:2x2x1
jax: 0.10.0
libtpu: 0.0.40
codegen_flags: <defaults>
</compile_context>

<pallas_src>
import functools

import jax
import jax.numpy as jnp
from jax import lax
from jax.experimental import pallas as pl
from jax.experimental.pallas import tpu as pltpu


# ----------------------------------------------------------------------------
# Kernel A: fused conv1(3x3,s1,p1)+BN+ReLU (+temb) -> conv2(3x3,s1,p1)+BN+ReLU
# ----------------------------------------------------------------------------
def _fused_conv1_conv2_kernel(xe_ref, w1_ref, s1_ref, te_ref, w2_ref, s2_ref,
                              mask_ref, o_ref, h1e_ref, *, hp, wp):
    """One batch sample per grid step; all intermediates stay in VMEM.

    xe_ref  : (1, Cin, Le)   bf16  zero-padded input, flattened row-major over
                                   the padded (Hp, Wp) grid, extended by
                                   M = Wp+1 zero lanes on each side so every
                                   3x3 tap is a static unit-stride lane slice.
    w1_ref  : (9, Cout, Cin)  bf16  conv1 weight (tap-major), BN scale folded in
    s1_ref  : (Cout, 1)       f32   folded conv1 bias + BN shift
    te_ref  : (1, Cout, 1)    f32   per-sample time embedding (added post-ReLU)
    w2_ref  : (9, Cout, Cout) bf16  conv2 weight (tap-major), BN scale folded in
    s2_ref  : (Cout, 1)       f32   folded conv2 bias + BN shift
    mask_ref: (1, L)          f32   1 on interior positions of the padded grid
    o_ref   : (1, Cout, L)    bf16  padded h2 (zero border), flattened
    h1e_ref : (Cout, Le)      bf16  VMEM scratch: padded + margin-extended h1
    """
    cout = o_ref.shape[1]
    L = hp * wp
    M = wp + 1
    mask = mask_ref[...]                                   # (1, L) f32

    # ---- conv1: 9 tap matmuls on the flat padded grid ----------------------
    acc = jnp.zeros((cout, L), jnp.float32)
    k = 0
    for kh in range(3):
        for kw in range(3):
            start = M + (kh - 1) * wp + (kw - 1)           # static, in [0, 2M]
            tap = xe_ref[0, :, start:start + L]            # (Cin, L) bf16
            acc = acc + jnp.dot(w1_ref[k], tap,
                                preferred_element_type=jnp.float32)
            k += 1
    # Downsampling epilogue: folded BN shift + ReLU, then +time_emb (matching
    # the PyTorch forward), then zero the padded-grid border (== conv2 padding).
    h1 = (jnp.maximum(acc + s1_ref[...], 0.0) + te_ref[0]) * mask

    # Stash padded h1 (bf16) in VMEM with the same zero lane margins.
    h1e_ref[...] = jnp.zeros_like(h1e_ref)
    h1e_ref[:, M:M + L] = h1.astype(h1e_ref.dtype)

    # ---- conv2: same tap structure, reading the VMEM scratch ----------------
    acc2 = jnp.zeros((cout, L), jnp.float32)
    k = 0
    for kh in range(3):
        for kw in range(3):
            start = M + (kh - 1) * wp + (kw - 1)
            tap = h1e_ref[:, start:start + L]              # (Cout, L) bf16
            acc2 = acc2 + jnp.dot(w2_ref[k], tap,
                                  preferred_element_type=jnp.float32)
            k += 1
    h2 = jnp.maximum(acc2 + s2_ref[...], 0.0) * mask       # zero border kept
    o_ref[0] = h2.astype(o_ref.dtype)


# ----------------------------------------------------------------------------
# Kernel B: 4x4 stride-2 transform conv on the parity planes of padded h2
# ----------------------------------------------------------------------------
def _transform_conv_kernel(pf_ref, w3_ref, b3_ref, o_ref, *, hh, wh):
    """16 unit-stride tap matmuls; stride-2 is absorbed by the parity planes.

    pf_ref : (1, 4, C, Lp) bf16  parity planes of padded h2, flattened row-major
                                 over the (Hh, Wh) half-res grid + Wh+1 zero lanes.
    w3_ref : (16, Cout, C) bf16  transform weight regrouped per (parity, tap)
    b3_ref : (Cout, 1)     f32
    o_ref  : (1, Cout, Lh) f32   output on the (Hh, Wh) grid; caller slices the
                                 valid (Ho, Wo) block.
    """
    cout = o_ref.shape[1]
    Lh = hh * wh
    acc = jnp.zeros((cout, Lh), jnp.float32)
    k = 0
    for i in range(2):              # kernel-tap row parity
        for j in range(2):          # kernel-tap col parity
            p = 2 * i + j
            for a in range(2):      # tap row within the parity plane
                for b in range(2):  # tap col within the parity plane
                    start = a * wh + b
                    tap = pf_ref[0, p, :, start:start + Lh]     # (C, Lh)
                    acc = acc + jnp.dot(w3_ref[k], tap,
                                        preferred_element_type=jnp.float32)
                    k += 1
    o_ref[0] = (acc + b3_ref[...]).astype(o_ref.dtype)


# ----------------------------------------------------------------------------
# pallas_call wrappers
# ----------------------------------------------------------------------------
def fused_conv1_conv2(xe, w1r, s1, temb, w2r, s2, mask, *, hp, wp,
                      out_dtype=jnp.bfloat16):
    N, cin, Le = xe.shape
    cout = w1r.shape[1]
    L = hp * wp
    kernel = functools.partial(_fused_conv1_conv2_kernel, hp=hp, wp=wp)
    return pl.pallas_call(
        kernel,
        out_shape=jax.ShapeDtypeStruct((N, cout, L), out_dtype),
        grid=(N,),
        in_specs=[
            pl.BlockSpec((1, cin, Le), lambda n: (n, 0, 0)),
            pl.BlockSpec((9, cout, cin), lambda n: (0, 0, 0)),
            pl.BlockSpec((cout, 1), lambda n: (0, 0)),
            pl.BlockSpec((1, cout, 1), lambda n: (n, 0, 0)),
            pl.BlockSpec((9, cout, cout), lambda n: (0, 0, 0)),
            pl.BlockSpec((cout, 1), lambda n: (0, 0)),
            pl.BlockSpec((1, L), lambda n: (0, 0)),
        ],
        out_specs=pl.BlockSpec((1, cout, L), lambda n: (n, 0, 0)),
        scratch_shapes=[pltpu.VMEM((cout, Le), jnp.bfloat16)],
        compiler_params=pltpu.CompilerParams(dimension_semantics=("parallel",)),
    )(xe, w1r, s1, temb, w2r, s2, mask)


def transform_conv(planes_flat, w3r, b3, *, hh, wh, out_dtype=jnp.float32):
    N, _, c, Lp = planes_flat.shape
    cout = w3r.shape[1]
    Lh = hh * wh
    kernel = functools.partial(_transform_conv_kernel, hh=hh, wh=wh)
    return pl.pallas_call(
        kernel,
        out_shape=jax.ShapeDtypeStruct((N, cout, Lh), out_dtype),
        grid=(N,),
        in_specs=[
            pl.BlockSpec((1, 4, c, Lp), lambda n: (n, 0, 0, 0)),
            pl.BlockSpec((16, cout, c), lambda n: (0, 0, 0)),
            pl.BlockSpec((cout, 1), lambda n: (0, 0)),
        ],
        out_specs=pl.BlockSpec((1, cout, Lh), lambda n: (n, 0, 0)),
        compiler_params=pltpu.CompilerParams(dimension_semantics=("parallel",)),
    )(planes_flat, w3r, b3)


# ----------------------------------------------------------------------------
# Parameter packing / glue (plain JAX)
# ----------------------------------------------------------------------------
def fold_bn(gamma, beta, rmean, rvar, eps=1e-5):
    scale = gamma / jnp.sqrt(rvar + eps)
    shift = beta - rmean * scale
    return scale, shift


def conv_weight_taps(w_oihw, scale=None):
    """(Cout, Cin, KH, KW) -> (KH*KW, Cout, Cin) bf16, tap-major, BN-scaled."""
    if scale is not None:
        w_oihw = w_oihw * scale[:, None, None, None]
    co, ci, kh, kw = w_oihw.shape
    return jnp.transpose(w_oihw, (2, 3, 0, 1)).reshape(kh * kw, co, ci).astype(
        jnp.bfloat16)


def init_params(key, cin, cout, tdim):
    ks = jax.random.split(key, 20)
    n = lambda k, shp, s=0.1: s * jax.random.normal(k, shp, jnp.float32)
    P = {}
    # conv1: 3x3 s1 p1, norm + relu
    P["w1"] = n(ks[0], (cout, cin, 3, 3)); P["b1"] = n(ks[1], (cout,), 0.05)
    P["g1"] = 1.0 + n(ks[2], (cout,)); P["be1"] = n(ks[3], (cout,), 0.05)
    P["rm1"] = n(ks[4], (cout,))
    P["rv1"] = jax.random.uniform(ks[5], (cout,), jnp.float32, 0.5, 1.5)
    # conv2: 3x3 s1 p1, norm + relu
    P["w2"] = n(ks[6], (cout, cout, 3, 3)); P["b2"] = n(ks[7], (cout,), 0.05)
    P["g2"] = 1.0 + n(ks[8], (cout,)); P["be2"] = n(ks[9], (cout,), 0.05)
    P["rm2"] = n(ks[10], (cout,))
    P["rv2"] = jax.random.uniform(ks[11], (cout,), jnp.float32, 0.5, 1.5)
    # transform: 4x4 s2 p1, no norm, no relu
    P["w3"] = n(ks[12], (cout, cout, 4, 4)); P["b3"] = n(ks[13], (cout,), 0.05)
    # time_mlp: Linear(tdim -> cout) + ReLU
    P["wt"] = n(ks[14], (cout, tdim)); P["bt"] = n(ks[15], (cout,), 0.05)
    return P


# ----------------------------------------------------------------------------
# Forward pass (Pallas) and pure-JAX reference
# ----------------------------------------------------------------------------
@jax.jit
def pallas_forward(x_nchw, t, P):
    N, cin, H, W = x_nchw.shape
    cout = P["w1"].shape[0]
    Hp, Wp = H + 2, W + 2
    L, M = Hp * Wp, Wp + 1

    sc1, sh1 = fold_bn(P["g1"], P["be1"], P["rm1"], P["rv1"])
    sc2, sh2 = fold_bn(P["g2"], P["be2"], P["rm2"], P["rv2"])

    # BN scale folded into the conv weight; conv bias folded into the shift.
    w1r = conv_weight_taps(P["w1"], sc1)                       # (9, cout, cin)
    s1 = (P["b1"] * sc1 + sh1).reshape(cout, 1)
    w2r = conv_weight_taps(P["w2"], sc2)                       # (9, cout, cout)
    s2 = (P["b2"] * sc2 + sh2).reshape(cout, 1)
    # transform weight regrouped per (row-parity i, col-parity j, tap a, tap b):
    # W3[:, :, 2a+i, 2b+j] multiplies parity plane (i, j) shifted by (a, b).
    w3 = P["w3"]
    w3r = jnp.stack([w3[:, :, 2 * a + i, 2 * b + j]
                     for i in range(2) for j in range(2)
                     for a in range(2) for b in range(2)], 0).astype(jnp.bfloat16)
    b3 = P["b3"].reshape(cout, 1)

    # time_mlp: tiny matmul -> plain XLA, result fused into conv1's epilogue.
    temb = jnp.maximum(t @ P["wt"].T + P["bt"], 0.0).reshape(N, cout, 1)

    # Pad x (zeros = conv1 padding), flatten the padded grid row-major and add
    # Wp+1 zero lanes of margin so every 3x3 tap is a static lane slice.
    xp = jnp.pad(x_nchw.astype(jnp.bfloat16), ((0, 0), (0, 0), (1, 1), (1, 1)))
    xe = jnp.pad(xp.reshape(N, cin, L), ((0, 0), (0, 0), (M, M)))
    # interior mask of the padded grid (1 where a real conv output lives)
    q = jnp.arange(L)
    r, s = q // Wp, q % Wp
    mask = ((r >= 1) & (r <= Hp - 2) & (s >= 1) & (s <= Wp - 2))
    mask = mask.astype(jnp.float32).reshape(1, L)

    # fused conv1 -> (+temb) -> conv2; output is the zero-padded h2, flattened.
    h2p_flat = fused_conv1_conv2(xe, w1r, s1, temb, w2r, s2, mask, hp=Hp, wp=Wp)

    # stride-2 phase split of padded h2 (cheap XLA strided slices).
    Hh, Wh = Hp // 2, Wp // 2
    h2p = h2p_flat.reshape(N, cout, Hp, Wp)
    planes = jnp.stack([h2p[:, :, i::2, j::2]
                        for i in range(2) for j in range(2)], axis=1)
    Lp = Hh * Wh + Wh + 1                    # margin for the (a, b) tap shifts
    planes_flat = jnp.pad(planes.reshape(N, 4, cout, Hh * Wh),
                          ((0, 0), (0, 0), (0, 0), (0, Lp - Hh * Wh)))

    out_half = transform_conv(planes_flat, w3r, b3, hh=Hh, wh=Wh)  # (N,cout,Hh*Wh) f32
    Ho, Wo = H // 2, W // 2
    return out_half.reshape(N, cout, Hh, Wh)[:, :, :Ho, :Wo]


def reference_forward(x_nchw, t, P):
    def conv(x, w, b, stride, pad):
        y = lax.conv_general_dilated(
            x, w, (stride, stride), [(pad, pad), (pad, pad)],
            dimension_numbers=("NCHW", "OIHW", "NCHW"))
        return y + b[None, :, None, None]

    sc1, sh1 = fold_bn(P["g1"], P["be1"], P["rm1"], P["rv1"])
    sc2, sh2 = fold_bn(P["g2"], P["be2"], P["rm2"], P["rv2"])

    h = conv(x_nchw, P["w1"], P["b1"], 1, 1)
    h = h * sc1[None, :, None, None] + sh1[None, :, None, None]
    h = jnp.maximum(h, 0.0)
    temb = jnp.maximum(t @ P["wt"].T + P["bt"], 0.0)
    h = h + temb[:, :, None, None]
    h = conv(h, P["w2"], P["b2"], 1, 1)
    h = h * sc2[None, :, None, None] + sh2[None, :, None, None]
    h = jnp.maximum(h, 0.0)
    return conv(h, P["w3"], P["b3"], 2, 1)


# ----------------------------------------------------------------------------
if __name__ == "__main__":
    N, Cin, Cout, H, W, Tdim = 2, 4, 8, 16, 16, 32

    key = jax.random.PRNGKey(0)
    kx, kt, kp = jax.random.split(key, 3)
    x = jax.random.normal(kx, (N, Cin, H, W), jnp.float32)     # PyTorch NCHW input
    t = jax.random.normal(kt, (N, Tdim), jnp.float32)
    params = init_params(kp, Cin, Cout, Tdim)

    out = pallas_forward(x, t, params)
    out = jax.block_until_ready(out)
    assert out.shape == (N, Cout, H // 2, W // 2), out.shape

    ref = jax.block_until_ready(reference_forward(x, t, params))
    max_err = float(jnp.max(jnp.abs(out - ref)))
    assert max_err < 5e-2, f"max abs error {max_err}"

    print("KERNEL_OK")
</pallas_src>

<mosaic_0001>
module attributes {stable_mosaic.version = 11 : i64} {
  func.func @_fused_conv1_conv2_kernel(%arg0: i32, %arg1: memref<1x4x362xbf16, #tpu.memory_space<vmem>>, %arg2: memref<9x8x4xbf16, #tpu.memory_space<vmem>>, %arg3: memref<8x1xf32, #tpu.memory_space<vmem>>, %arg4: memref<1x8x1xf32, #tpu.memory_space<vmem>>, %arg5: memref<9x8x8xbf16, #tpu.memory_space<vmem>>, %arg6: memref<8x1xf32, #tpu.memory_space<vmem>>, %arg7: memref<1x324xf32, #tpu.memory_space<vmem>>, %arg8: memref<1x8x324xbf16, #tpu.memory_space<vmem>>, %arg9: memref<8x362xbf16, #tpu.memory_space<vmem>>) attributes {dimension_semantics = [#tpu.dimension_semantics<parallel>], iteration_bounds = array<i64: 2>, scalar_prefetch = 0 : i64, scratch_operands = 1 : i64, tpu.core_type = #tpu.core_type<tc>, window_params = [{transform_indices = @transform_0, window_bounds = array<i64: 1, 4, 362>}, {pipeline_mode = #tpu.pipeline_mode<synchronous>, transform_indices = @transform_1, window_bounds = array<i64: 9, 8, 4>}, {pipeline_mode = #tpu.pipeline_mode<synchronous>, transform_indices = @transform_2, window_bounds = array<i64: 8, 1>}, {transform_indices = @transform_3, window_bounds = array<i64: 1, 8, 1>}, {pipeline_mode = #tpu.pipeline_mode<synchronous>, transform_indices = @transform_4, window_bounds = array<i64: 9, 8, 8>}, {pipeline_mode = #tpu.pipeline_mode<synchronous>, transform_indices = @transform_5, window_bounds = array<i64: 8, 1>}, {pipeline_mode = #tpu.pipeline_mode<synchronous>, transform_indices = @transform_6, window_bounds = array<i64: 1, 324>}, {transform_indices = @transform_7, window_bounds = array<i64: 1, 8, 324>}]} {
    %c0 = arith.constant 0 : index
    %c0_0 = arith.constant 0 : index
    %0 = vector.load %arg7[%c0, %c0_0] : memref<1x324xf32, #tpu.memory_space<vmem>>, vector<1x324xf32>
    %cst = arith.constant 0.000000e+00 : f32
    %1 = vector.broadcast %cst : f32 to vector<8x324xf32>
    %c0_1 = arith.constant 0 : index
    %c0_2 = arith.constant 0 : index
    %c0_3 = arith.constant 0 : index
    %2 = vector.load %arg1[%c0_1, %c0_2, %c0_3] : memref<1x4x362xbf16, #tpu.memory_space<vmem>>, vector<1x4x324xbf16>
    %3 = vector.shape_cast %2 : vector<1x4x324xbf16> to vector<4x324xbf16>
    %c0_4 = arith.constant 0 : index
    %c0_5 = arith.constant 0 : index
    %c0_6 = arith.constant 0 : index
    %4 = vector.load %arg2[%c0_4, %c0_5, %c0_6] : memref<9x8x4xbf16, #tpu.memory_space<vmem>>, vector<1x8x4xbf16>
    %5 = vector.shape_cast %4 : vector<1x8x4xbf16> to vector<8x4xbf16>
    %cst_7 = arith.constant dense<0.000000e+00> : vector<8x324xf32>
    %6 = tpu.matmul %5, %3, %cst_7 {dimension_numbers = #tpu.dot_dimension_numbers<[1], [0], [0], [1], [0, 0, 1, 1], [], []>} : vector<8x4xbf16>, vector<4x324xbf16>, vector<8x324xf32> -> vector<8x324xf32>
    %7 = arith.addf %1, %6 : vector<8x324xf32>
    %c0_8 = arith.constant 0 : index
    %c0_9 = arith.constant 0 : index
    %c1 = arith.constant 1 : index
    %8 = vector.load %arg1[%c0_8, %c0_9, %c1] : memref<1x4x362xbf16, #tpu.memory_space<vmem>>, vector<1x4x324xbf16>
    %9 = vector.shape_cast %8 : vector<1x4x324xbf16> to vector<4x324xbf16>
    %c1_10 = arith.constant 1 : index
    %c0_11 = arith.constant 0 : index
    %c0_12 = arith.constant 0 : index
    %10 = vector.load %arg2[%c1_10, %c0_11, %c0_12] : memref<9x8x4xbf16, #tpu.memory_space<vmem>>, vector<1x8x4xbf16>
    %11 = vector.shape_cast %10 : vector<1x8x4xbf16> to vector<8x4xbf16>
    %cst_13 = arith.constant dense<0.000000e+00> : vector<8x324xf32>
    %12 = tpu.matmul %11, %9, %cst_13 {dimension_numbers = #tpu.dot_dimension_numbers<[1], [0], [0], [1], [0, 0, 1, 1], [], []>} : vector<8x4xbf16>, vector<4x324xbf16>, vector<8x324xf32> -> vector<8x324xf32>
    %13 = arith.addf %7, %12 : vector<8x324xf32>
    %c0_14 = arith.constant 0 : index
    %c0_15 = arith.constant 0 : index
    %c2 = arith.constant 2 : index
    %14 = vector.load %arg1[%c0_14, %c0_15, %c2] : memref<1x4x362xbf16, #tpu.memory_space<vmem>>, vector<1x4x324xbf16>
    %15 = vector.shape_cast %14 : vector<1x4x324xbf16> to vector<4x324xbf16>
    %c2_16 = arith.constant 2 : index
    %c0_17 = arith.constant 0 : index
    %c0_18 = arith.constant 0 : index
    %16 = vector.load %arg2[%c2_16, %c0_17, %c0_18] : memref<9x8x4xbf16, #tpu.memory_space<vmem>>, vector<1x8x4xbf16>
    %17 = vector.shape_cast %16 : vector<1x8x4xbf16> to vector<8x4xbf16>
    %cst_19 = arith.constant dense<0.000000e+00> : vector<8x324xf32>
    %18 = tpu.matmul %17, %15, %cst_19 {dimension_numbers = #tpu.dot_dimension_numbers<[1], [0], [0], [1], [0, 0, 1, 1], [], []>} : vector<8x4xbf16>, vector<4x324xbf16>, vector<8x324xf32> -> vector<8x324xf32>
    %19 = arith.addf %13, %18 : vector<8x324xf32>
    %c0_20 = arith.constant 0 : index
    %c0_21 = arith.constant 0 : index
    %c18 = arith.constant 18 : index
    %20 = vector.load %arg1[%c0_20, %c0_21, %c18] : memref<1x4x362xbf16, #tpu.memory_space<vmem>>, vector<1x4x324xbf16>
    %21 = vector.shape_cast %20 : vector<1x4x324xbf16> to vector<4x324xbf16>
    %c3 = arith.constant 3 : index
    %c0_22 = arith.constant 0 : index
    %c0_23 = arith.constant 0 : index
    %22 = vector.load %arg2[%c3, %c0_22, %c0_23] : memref<9x8x4xbf16, #tpu.memory_space<vmem>>, vector<1x8x4xbf16>
    %23 = vector.shape_cast %22 : vector<1x8x4xbf16> to vector<8x4xbf16>
    %cst_24 = arith.constant dense<0.000000e+00> : vector<8x324xf32>
    %24 = tpu.matmul %23, %21, %cst_24 {dimension_numbers = #tpu.dot_dimension_numbers<[1], [0], [0], [1], [0, 0, 1, 1], [], []>} : vector<8x4xbf16>, vector<4x324xbf16>, vector<8x324xf32> -> vector<8x324xf32>
    %25 = arith.addf %19, %24 : vector<8x324xf32>
    %c0_25 = arith.constant 0 : index
    %c0_26 = arith.constant 0 : index
    %c19 = arith.constant 19 : index
    %26 = vector.load %arg1[%c0_25, %c0_26, %c19] : memref<1x4x362xbf16, #tpu.memory_space<vmem>>, vector<1x4x324xbf16>
    %27 = vector.shape_cast %26 : vector<1x4x324xbf16> to vector<4x324xbf16>
    %c4 = arith.constant 4 : index
    %c0_27 = arith.constant 0 : index
    %c0_28 = arith.constant 0 : index
    %28 = vector.load %arg2[%c4, %c0_27, %c0_28] : memref<9x8x4xbf16, #tpu.memory_space<vmem>>, vector<1x8x4xbf16>
    %29 = vector.shape_cast %28 : vector<1x8x4xbf16> to vector<8x4xbf16>
    %cst_29 = arith.constant dense<0.000000e+00> : vector<8x324xf32>
    %30 = tpu.matmul %29, %27, %cst_29 {dimension_numbers = #tpu.dot_dimension_numbers<[1], [0], [0], [1], [0, 0, 1, 1], [], []>} : vector<8x4xbf16>, vector<4x324xbf16>, vector<8x324xf32> -> vector<8x324xf32>
    %31 = arith.addf %25, %30 : vector<8x324xf32>
    %c0_30 = arith.constant 0 : index
    %c0_31 = arith.constant 0 : index
    %c20 = arith.constant 20 : index
    %32 = vector.load %arg1[%c0_30, %c0_31, %c20] : memref<1x4x362xbf16, #tpu.memory_space<vmem>>, vector<1x4x324xbf16>
    %33 = vector.shape_cast %32 : vector<1x4x324xbf16> to vector<4x324xbf16>
    %c5 = arith.constant 5 : index
    %c0_32 = arith.constant 0 : index
    %c0_33 = arith.constant 0 : index
    %34 = vector.load %arg2[%c5, %c0_32, %c0_33] : memref<9x8x4xbf16, #tpu.memory_space<vmem>>, vector<1x8x4xbf16>
    %35 = vector.shape_cast %34 : vector<1x8x4xbf16> to vector<8x4xbf16>
    %cst_34 = arith.constant dense<0.000000e+00> : vector<8x324xf32>
    %36 = tpu.matmul %35, %33, %cst_34 {dimension_numbers = #tpu.dot_dimension_numbers<[1], [0], [0], [1], [0, 0, 1, 1], [], []>} : vector<8x4xbf16>, vector<4x324xbf16>, vector<8x324xf32> -> vector<8x324xf32>
    %37 = arith.addf %31, %36 : vector<8x324xf32>
    %c0_35 = arith.constant 0 : index
    %c0_36 = arith.constant 0 : index
    %c36 = arith.constant 36 : index
    %38 = vector.load %arg1[%c0_35, %c0_36, %c36] : memref<1x4x362xbf16, #tpu.memory_space<vmem>>, vector<1x4x324xbf16>
    %39 = vector.shape_cast %38 : vector<1x4x324xbf16> to vector<4x324xbf16>
    %c6 = arith.constant 6 : index
    %c0_37 = arith.constant 0 : index
    %c0_38 = arith.constant 0 : index
    %40 = vector.load %arg2[%c6, %c0_37, %c0_38] : memref<9x8x4xbf16, #tpu.memory_space<vmem>>, vector<1x8x4xbf16>
    %41 = vector.shape_cast %40 : vector<1x8x4xbf16> to vector<8x4xbf16>
    %cst_39 = arith.constant dense<0.000000e+00> : vector<8x324xf32>
    %42 = tpu.matmul %41, %39, %cst_39 {dimension_numbers = #tpu.dot_dimension_numbers<[1], [0], [0], [1], [0, 0, 1, 1], [], []>} : vector<8x4xbf16>, vector<4x324xbf16>, vector<8x324xf32> -> vector<8x324xf32>
    %43 = arith.addf %37, %42 : vector<8x324xf32>
    %c0_40 = arith.constant 0 : index
    %c0_41 = arith.constant 0 : index
    %c37 = arith.constant 37 : index
    %44 = vector.load %arg1[%c0_40, %c0_41, %c37] : memref<1x4x362xbf16, #tpu.memory_space<vmem>>, vector<1x4x324xbf16>
    %45 = vector.shape_cast %44 : vector<1x4x324xbf16> to vector<4x324xbf16>
    %c7 = arith.constant 7 : index
    %c0_42 = arith.constant 0 : index
    %c0_43 = arith.constant 0 : index
    %46 = vector.load %arg2[%c7, %c0_42, %c0_43] : memref<9x8x4xbf16, #tpu.memory_space<vmem>>, vector<1x8x4xbf16>
    %47 = vector.shape_cast %46 : vector<1x8x4xbf16> to vector<8x4xbf16>
    %cst_44 = arith.constant dense<0.000000e+00> : vector<8x324xf32>
    %48 = tpu.matmul %47, %45, %cst_44 {dimension_numbers = #tpu.dot_dimension_numbers<[1], [0], [0], [1], [0, 0, 1, 1], [], []>} : vector<8x4xbf16>, vector<4x324xbf16>, vector<8x324xf32> -> vector<8x324xf32>
    %49 = arith.addf %43, %48 : vector<8x324xf32>
    %c0_45 = arith.constant 0 : index
    %c0_46 = arith.constant 0 : index
    %c38 = arith.constant 38 : index
    %50 = vector.load %arg1[%c0_45, %c0_46, %c38] : memref<1x4x362xbf16, #tpu.memory_space<vmem>>, vector<1x4x324xbf16>
    %51 = vector.shape_cast %50 : vector<1x4x324xbf16> to vector<4x324xbf16>
    %c8 = arith.constant 8 : index
    %c0_47 = arith.constant 0 : index
    %c0_48 = arith.constant 0 : index
    %52 = vector.load %arg2[%c8, %c0_47, %c0_48] : memref<9x8x4xbf16, #tpu.memory_space<vmem>>, vector<1x8x4xbf16>
    %53 = vector.shape_cast %52 : vector<1x8x4xbf16> to vector<8x4xbf16>
    %cst_49 = arith.constant dense<0.000000e+00> : vector<8x324xf32>
    %54 = tpu.matmul %53, %51, %cst_49 {dimension_numbers = #tpu.dot_dimension_numbers<[1], [0], [0], [1], [0, 0, 1, 1], [], []>} : vector<8x4xbf16>, vector<4x324xbf16>, vector<8x324xf32> -> vector<8x324xf32>
    %55 = arith.addf %49, %54 : vector<8x324xf32>
    %c0_50 = arith.constant 0 : index
    %c0_51 = arith.constant 0 : index
    %56 = vector.load %arg3[%c0_50, %c0_51] : memref<8x1xf32, #tpu.memory_space<vmem>>, vector<8x1xf32>
    %57 = vector.broadcast %56 : vector<8x1xf32> to vector<8x324xf32>
    %58 = arith.addf %55, %57 : vector<8x324xf32>
    %cst_52 = arith.constant 0.000000e+00 : f32
    %59 = vector.broadcast %cst_52 : f32 to vector<8x324xf32>
    %60 = arith.maximumf %58, %59 : vector<8x324xf32>
    %c0_53 = arith.constant 0 : index
    %c0_54 = arith.constant 0 : index
    %c0_55 = arith.constant 0 : index
    %61 = vector.load %arg4[%c0_53, %c0_54, %c0_55] : memref<1x8x1xf32, #tpu.memory_space<vmem>>, vector<1x8x1xf32>
    %62 = vector.shape_cast %61 : vector<1x8x1xf32> to vector<8x1xf32>
    %63 = vector.broadcast %62 : vector<8x1xf32> to vector<8x324xf32>
    %64 = arith.addf %60, %63 : vector<8x324xf32>
    %65 = vector.broadcast %0 : vector<1x324xf32> to vector<8x324xf32>
    %66 = arith.mulf %64, %65 : vector<8x324xf32>
    %cst_56 = arith.constant 0.000000e+00 : bf16
    %67 = vector.broadcast %cst_56 : bf16 to vector<8x362xbf16>
    %c0_57 = arith.constant 0 : index
    %c0_58 = arith.constant 0 : index
    %68 = vector.load %arg9[%c0_57, %c0_58] : memref<8x362xbf16, #tpu.memory_space<vmem>>, vector<8x362xbf16>
    tpu.vector_store %arg9[%c0_57, %c0_58], %67 {strides = array<i32>} : memref<8x362xbf16, #tpu.memory_space<vmem>>, vector<8x362xbf16>,
    %69 = arith.truncf %66 : vector<8x324xf32> to vector<8x324xbf16>
    %c0_59 = arith.constant 0 : index
    %c19_60 = arith.constant 19 : index
    %70 = vector.load %arg9[%c0_59, %c19_60] : memref<8x362xbf16, #tpu.memory_space<vmem>>, vector<8x324xbf16>
    tpu.vector_store %arg9[%c0_59, %c19_60], %69 {strides = array<i32>} : memref<8x362xbf16, #tpu.memory_space<vmem>>, vector<8x324xbf16>,
    %cst_61 = arith.constant 0.000000e+00 : f32
    %71 = vector.broadcast %cst_61 : f32 to vector<8x324xf32>
    %c0_62 = arith.constant 0 : index
    %c0_63 = arith.constant 0 : index
    %72 = vector.load %arg9[%c0_62, %c0_63] : memref<8x362xbf16, #tpu.memory_space<vmem>>, vector<8x324xbf16>
    %c0_64 = arith.constant 0 : index
    %c0_65 = arith.constant 0 : index
    %c0_66 = arith.constant 0 : index
    %73 = vector.load %arg5[%c0_64, %c0_65, %c0_66] : memref<9x8x8xbf16, #tpu.memory_space<vmem>>, vector<1x8x8xbf16>
    %74 = vector.shape_cast %73 : vector<1x8x8xbf16> to vector<8x8xbf16>
    %cst_67 = arith.constant dense<0.000000e+00> : vector<8x324xf32>
    %75 = tpu.matmul %74, %72, %cst_67 {dimension_numbers = #tpu.dot_dimension_numbers<[1], [0], [0], [1], [0, 0, 1, 1], [], []>} : vector<8x8xbf16>, vector<8x324xbf16>, vector<8x324xf32> -> vector<8x324xf32>
    %76 = arith.addf %71, %75 : vector<8x324xf32>
    %c0_68 = arith.constant 0 : index
    %c1_69 = arith.constant 1 : index
    %77 = vector.load %arg9[%c0_68, %c1_69] : memref<8x362xbf16, #tpu.memory_space<vmem>>, vector<8x324xbf16>
    %c1_70 = arith.constant 1 : index
    %c0_71 = arith.constant 0 : index
    %c0_72 = arith.constant 0 : index
    %78 = vector.load %arg5[%c1_70, %c0_71, %c0_72] : memref<9x8x8xbf16, #tpu.memory_space<vmem>>, vector<1x8x8xbf16>
    %79 = vector.shape_cast %78 : vector<1x8x8xbf16> to vector<8x8xbf16>
    %cst_73 = arith.constant dense<0.000000e+00> : vector<8x324xf32>
    %80 = tpu.matmul %79, %77, %cst_73 {dimension_numbers = #tpu.dot_dimension_numbers<[1], [0], [0], [1], [0, 0, 1, 1], [], []>} : vector<8x8xbf16>, vector<8x324xbf16>, vector<8x324xf32> -> vector<8x324xf32>
    %81 = arith.addf %76, %80 : vector<8x324xf32>
    %c0_74 = arith.constant 0 : index
    %c2_75 = arith.constant 2 : index
    %82 = vector.load %arg9[%c0_74, %c2_75] : memref<8x362xbf16, #tpu.memory_space<vmem>>, vector<8x324xbf16>
    %c2_76 = arith.constant 2 : index
    %c0_77 = arith.constant 0 : index
    %c0_78 = arith.constant 0 : index
    %83 = vector.load %arg5[%c2_76, %c0_77, %c0_78] : memref<9x8x8xbf16, #tpu.memory_space<vmem>>, vector<1x8x8xbf16>
    %84 = vector.shape_cast %83 : vector<1x8x8xbf16> to vector<8x8xbf16>
    %cst_79 = arith.constant dense<0.000000e+00> : vector<8x324xf32>
    %85 = tpu.matmul %84, %82, %cst_79 {dimension_numbers = #tpu.dot_dimension_numbers<[1], [0], [0], [1], [0, 0, 1, 1], [], []>} : vector<8x8xbf16>, vector<8x324xbf16>, vector<8x324xf32> -> vector<8x324xf32>
    %86 = arith.addf %81, %85 : vector<8x324xf32>
    %c0_80 = arith.constant 0 : index
    %c18_81 = arith.constant 18 : index
    %87 = vector.load %arg9[%c0_80, %c18_81] : memref<8x362xbf16, #tpu.memory_space<vmem>>, vector<8x324xbf16>
    %c3_82 = arith.constant 3 : index
    %c0_83 = arith.constant 0 : index
    %c0_84 = arith.constant 0 : index
    %88 = vector.load %arg5[%c3_82, %c0_83, %c0_84] : memref<9x8x8xbf16, #tpu.memory_space<vmem>>, vector<1x8x8xbf16>
    %89 = vector.shape_cast %88 : vector<1x8x8xbf16> to vector<8x8xbf16>
    %cst_85 = arith.constant dense<0.000000e+00> : vector<8x324xf32>
    %90 = tpu.matmul %89, %87, %cst_85 {dimension_numbers = #tpu.dot_dimension_numbers<[1], [0], [0], [1], [0, 0, 1, 1], [], []>} : vector<8x8xbf16>, vector<8x324xbf16>, vector<8x324xf32> -> vector<8x324xf32>
    %91 = arith.addf %86, %90 : vector<8x324xf32>
    %c0_86 = arith.constant 0 : index
    %c19_87 = arith.constant 19 : index
    %92 = vector.load %arg9[%c0_86, %c19_87] : memref<8x362xbf16, #tpu.memory_space<vmem>>, vector<8x324xbf16>
    %c4_88 = arith.constant 4 : index
    %c0_89 = arith.constant 0 : index
    %c0_90 = arith.constant 0 : index
    %93 = vector.load %arg5[%c4_88, %c0_89, %c0_90] : memref<9x8x8xbf16, #tpu.memory_space<vmem>>, vector<1x8x8xbf16>
    %94 = vector.shape_cast %93 : vector<1x8x8xbf16> to vector<8x8xbf16>
    %cst_91 = arith.constant dense<0.000000e+00> : vector<8x324xf32>
    %95 = tpu.matmul %94, %92, %cst_91 {dimension_numbers = #tpu.dot_dimension_numbers<[1], [0], [0], [1], [0, 0, 1, 1], [], []>} : vector<8x8xbf16>, vector<8x324xbf16>, vector<8x324xf32> -> vector<8x324xf32>
    %96 = arith.addf %91, %95 : vector<8x324xf32>
    %c0_92 = arith.constant 0 : index
    %c20_93 = arith.constant 20 : index
    %97 = vector.load %arg9[%c0_92, %c20_93] : memref<8x362xbf16, #tpu.memory_space<vmem>>, vector<8x324xbf16>
    %c5_94 = arith.constant 5 : index
    %c0_95 = arith.constant 0 : index
    %c0_96 = arith.constant 0 : index
    %98 = vector.load %arg5[%c5_94, %c0_95, %c0_96] : memref<9x8x8xbf16, #tpu.memory_space<vmem>>, vector<1x8x8xbf16>
    %99 = vector.shape_cast %98 : vector<1x8x8xbf16> to vector<8x8xbf16>
    %cst_97 = arith.constant dense<0.000000e+00> : vector<8x324xf32>
    %100 = tpu.matmul %99, %97, %cst_97 {dimension_numbers = #tpu.dot_dimension_numbers<[1], [0], [0], [1], [0, 0, 1, 1], [], []>} : vector<8x8xbf16>, vector<8x324xbf16>, vector<8x324xf32> -> vector<8x324xf32>
    %101 = arith.addf %96, %100 : vector<8x324xf32>
    %c0_98 = arith.constant 0 : index
    %c36_99 = arith.constant 36 : index
    %102 = vector.load %arg9[%c0_98, %c36_99] : memref<8x362xbf16, #tpu.memory_space<vmem>>, vector<8x324xbf16>
    %c6_100 = arith.constant 6 : index
    %c0_101 = arith.constant 0 : index
    %c0_102 = arith.constant 0 : index
    %103 = vector.load %arg5[%c6_100, %c0_101, %c0_102] : memref<9x8x8xbf16, #tpu.memory_space<vmem>>, vector<1x8x8xbf16>
    %104 = vector.shape_cast %103 : vector<1x8x8xbf16> to vector<8x8xbf16>
    %cst_103 = arith.constant dense<0.000000e+00> : vector<8x324xf32>
    %105 = tpu.matmul %104, %102, %cst_103 {dimension_numbers = #tpu.dot_dimension_numbers<[1], [0], [0], [1], [0, 0, 1, 1], [], []>} : vector<8x8xbf16>, vector<8x324xbf16>, vector<8x324xf32> -> vector<8x324xf32>
    %106 = arith.addf %101, %105 : vector<8x324xf32>
    %c0_104 = arith.constant 0 : index
    %c37_105 = arith.constant 37 : index
    %107 = vector.load %arg9[%c0_104, %c37_105] : memref<8x362xbf16, #tpu.memory_space<vmem>>, vector<8x324xbf16>
    %c7_106 = arith.constant 7 : index
    %c0_107 = arith.constant 0 : index
    %c0_108 = arith.constant 0 : index
    %108 = vector.load %arg5[%c7_106, %c0_107, %c0_108] : memref<9x8x8xbf16, #tpu.memory_space<vmem>>, vector<1x8x8xbf16>
    %109 = vector.shape_cast %108 : vector<1x8x8xbf16> to vector<8x8xbf16>
    %cst_109 = arith.constant dense<0.000000e+00> : vector<8x324xf32>
    %110 = tpu.matmul %109, %107, %cst_109 {dimension_numbers = #tpu.dot_dimension_numbers<[1], [0], [0], [1], [0, 0, 1, 1], [], []>} : vector<8x8xbf16>, vector<8x324xbf16>, vector<8x324xf32> -> vector<8x324xf32>
    %111 = arith.addf %106, %110 : vector<8x324xf32>
    %c0_110 = arith.constant 0 : index
    %c38_111 = arith.constant 38 : index
    %112 = vector.load %arg9[%c0_110, %c38_111] : memref<8x362xbf16, #tpu.memory_space<vmem>>, vector<8x324xbf16>
    %c8_112 = arith.constant 8 : index
    %c0_113 = arith.constant 0 : index
    %c0_114 = arith.constant 0 : index
    %113 = vector.load %arg5[%c8_112, %c0_113, %c0_114] : memref<9x8x8xbf16, #tpu.memory_space<vmem>>, vector<1x8x8xbf16>
    %114 = vector.shape_cast %113 : vector<1x8x8xbf16> to vector<8x8xbf16>
    %cst_115 = arith.constant dense<0.000000e+00> : vector<8x324xf32>
    %115 = tpu.matmul %114, %112, %cst_115 {dimension_numbers = #tpu.dot_dimension_numbers<[1], [0], [0], [1], [0, 0, 1, 1], [], []>} : vector<8x8xbf16>, vector<8x324xbf16>, vector<8x324xf32> -> vector<8x324xf32>
    %116 = arith.addf %111, %115 : vector<8x324xf32>
    %c0_116 = arith.constant 0 : index
    %c0_117 = arith.constant 0 : index
    %117 = vector.load %arg6[%c0_116, %c0_117] : memref<8x1xf32, #tpu.memory_space<vmem>>, vector<8x1xf32>
    %118 = vector.broadcast %117 : vector<8x1xf32> to vector<8x324xf32>
    %119 = arith.addf %116, %118 : vector<8x324xf32>
    %cst_118 = arith.constant 0.000000e+00 : f32
    %120 = vector.broadcast %cst_118 : f32 to vector<8x324xf32>
    %121 = arith.maximumf %119, %120 : vector<8x324xf32>
    %122 = vector.broadcast %0 : vector<1x324xf32> to vector<8x324xf32>
    %123 = arith.mulf %121, %122 : vector<8x324xf32>
    %124 = arith.truncf %123 : vector<8x324xf32> to vector<8x324xbf16>
    %c0_119 = arith.constant 0 : index
    %c0_120 = arith.constant 0 : index
    %c0_121 = arith.constant 0 : index
    %125 = vector.load %arg8[%c0_119, %c0_120, %c0_121] : memref<1x8x324xbf16, #tpu.memory_space<vmem>>, vector<1x8x324xbf16>
    %126 = vector.shape_cast %125 : vector<1x8x324xbf16> to vector<8x324xbf16>
    %127 = vector.shape_cast %124 : vector<8x324xbf16> to vector<1x8x324xbf16>
    tpu.vector_store %arg8[%c0_119, %c0_120, %c0_121], %127 {strides = array<i32>} : memref<1x8x324xbf16, #tpu.memory_space<vmem>>, vector<1x8x324xbf16>,
    return
  }
  func.func @transform_0(%arg0: i32) -> (i32, i32, i32) {
    %c0_i32 = arith.constant 0 : i32
    %c0_i32_0 = arith.constant 0 : i32
    %c0_i32_1 = arith.constant 0 : i32
    return %arg0, %c0_i32, %c0_i32_0 : i32, i32, i32
  }
  func.func @transform_1(%arg0: i32) -> (i32, i32, i32) {
    %c0_i32 = arith.constant 0 : i32
    %c0_i32_0 = arith.constant 0 : i32
    %c0_i32_1 = arith.constant 0 : i32
    %c0_i32_2 = arith.constant 0 : i32
    return %c0_i32, %c0_i32_0, %c0_i32_1 : i32, i32, i32
  }
  func.func @transform_2(%arg0: i32) -> (i32, i32) {
    %c0_i32 = arith.constant 0 : i32
    %c0_i32_0 = arith.constant 0 : i32
    %c0_i32_1 = arith.constant 0 : i32
    return %c0_i32, %c0_i32_0 : i32, i32
  }
  func.func @transform_3(%arg0: i32) -> (i32, i32, i32) {
    %c0_i32 = arith.constant 0 : i32
    %c0_i32_0 = arith.constant 0 : i32
    %c0_i32_1 = arith.constant 0 : i32
    return %arg0, %c0_i32, %c0_i32_0 : i32, i32, i32
  }
  func.func @transform_4(%arg0: i32) -> (i32, i32, i32) {
    %c0_i32 = arith.constant 0 : i32
    %c0_i32_0 = arith.constant 0 : i32
    %c0_i32_1 = arith.constant 0 : i32
    %c0_i32_2 = arith.constant 0 : i32
    return %c0_i32, %c0_i32_0, %c0_i32_1 : i32, i32, i32
  }
  func.func @transform_5(%arg0: i32) -> (i32, i32) {
    %c0_i32 = arith.constant 0 : i32
    %c0_i32_0 = arith.constant 0 : i32
    %c0_i32_1 = arith.constant 0 : i32
    return %c0_i32, %c0_i32_0 : i32, i32
  }
  func.func @transform_6(%arg0: i32) -> (i32, i32) {
    %c0_i32 = arith.constant 0 : i32
    %c0_i32_0 = arith.constant 0 : i32
    %c0_i32_1 = arith.constant 0 : i32
    return %c0_i32, %c0_i32_0 : i32, i32
  }
  func.func @transform_7(%arg0: i32) -> (i32, i32, i32) {
    %c0_i32 = arith.constant 0 : i32
    %c0_i32_0 = arith.constant 0 : i32
    %c0_i32_1 = arith.constant 0 : i32
    return %arg0, %c0_i32, %c0_i32_0 : i32, i32, i32
  }
}

module attributes {stable_mosaic.version = 11 : i64} {
  func.func @_transform_conv_kernel(%arg0: i32, %arg1: memref<1x4x8x91xbf16, #tpu.memory_space<vmem>>, %arg2: memref<16x8x8xbf16, #tpu.memory_space<vmem>>, %arg3: memref<8x1xf32, #tpu.memory_space<vmem>>, %arg4: memref<1x8x81xf32, #tpu.memory_space<vmem>>) attributes {dimension_semantics = [#tpu.dimension_semantics<parallel>], iteration_bounds = array<i64: 2>, scalar_prefetch = 0 : i64, scratch_operands = 0 : i64, tpu.core_type = #tpu.core_type<tc>, window_params = [{transform_indices = @transform_0, window_bounds = array<i64: 1, 4, 8, 91>}, {pipeline_mode = #tpu.pipeline_mode<synchronous>, transform_indices = @transform_1, window_bounds = array<i64: 16, 8, 8>}, {pipeline_mode = #tpu.pipeline_mode<synchronous>, transform_indices = @transform_2, window_bounds = array<i64: 8, 1>}, {transform_indices = @transform_3, window_bounds = array<i64: 1, 8, 81>}]} {
    %cst = arith.constant 0.000000e+00 : f32
    %0 = vector.broadcast %cst : f32 to vector<8x81xf32>
    %c0 = arith.constant 0 : index
    %c0_0 = arith.constant 0 : index
    %c0_1 = arith.constant 0 : index
    %c0_2 = arith.constant 0 : index
    %1 = vector.load %arg1[%c0, %c0_0, %c0_1, %c0_2] : memref<1x4x8x91xbf16, #tpu.memory_space<vmem>>, vector<1x1x8x81xbf16>
    %2 = vector.shape_cast %1 : vector<1x1x8x81xbf16> to vector<8x81xbf16>
    %c0_3 = arith.constant 0 : index
    %c0_4 = arith.constant 0 : index
    %c0_5 = arith.constant 0 : index
    %3 = vector.load %arg2[%c0_3, %c0_4, %c0_5] : memref<16x8x8xbf16, #tpu.memory_space<vmem>>, vector<1x8x8xbf16>
    %4 = vector.shape_cast %3 : vector<1x8x8xbf16> to vector<8x8xbf16>
    %cst_6 = arith.constant dense<0.000000e+00> : vector<8x81xf32>
    %5 = tpu.matmul %4, %2, %cst_6 {dimension_numbers = #tpu.dot_dimension_numbers<[1], [0], [0], [1], [0, 0, 1, 1], [], []>} : vector<8x8xbf16>, vector<8x81xbf16>, vector<8x81xf32> -> vector<8x81xf32>
    %6 = arith.addf %0, %5 : vector<8x81xf32>
    %c0_7 = arith.constant 0 : index
    %c0_8 = arith.constant 0 : index
    %c0_9 = arith.constant 0 : index
    %c1 = arith.constant 1 : index
    %7 = vector.load %arg1[%c0_7, %c0_8, %c0_9, %c1] : memref<1x4x8x91xbf16, #tpu.memory_space<vmem>>, vector<1x1x8x81xbf16>
    %8 = vector.shape_cast %7 : vector<1x1x8x81xbf16> to vector<8x81xbf16>
    %c1_10 = arith.constant 1 : index
    %c0_11 = arith.constant 0 : index
    %c0_12 = arith.constant 0 : index
    %9 = vector.load %arg2[%c1_10, %c0_11, %c0_12] : memref<16x8x8xbf16, #tpu.memory_space<vmem>>, vector<1x8x8xbf16>
    %10 = vector.shape_cast %9 : vector<1x8x8xbf16> to vector<8x8xbf16>
    %cst_13 = arith.constant dense<0.000000e+00> : vector<8x81xf32>
    %11 = tpu.matmul %10, %8, %cst_13 {dimension_numbers = #tpu.dot_dimension_numbers<[1], [0], [0], [1], [0, 0, 1, 1], [], []>} : vector<8x8xbf16>, vector<8x81xbf16>, vector<8x81xf32> -> vector<8x81xf32>
    %12 = arith.addf %6, %11 : vector<8x81xf32>
    %c0_14 = arith.constant 0 : index
    %c0_15 = arith.constant 0 : index
    %c0_16 = arith.constant 0 : index
    %c9 = arith.constant 9 : index
    %13 = vector.load %arg1[%c0_14, %c0_15, %c0_16, %c9] : memref<1x4x8x91xbf16, #tpu.memory_space<vmem>>, vector<1x1x8x81xbf16>
    %14 = vector.shape_cast %13 : vector<1x1x8x81xbf16> to vector<8x81xbf16>
    %c2 = arith.constant 2 : index
    %c0_17 = arith.constant 0 : index
    %c0_18 = arith.constant 0 : index
    %15 = vector.load %arg2[%c2, %c0_17, %c0_18] : memref<16x8x8xbf16, #tpu.memory_space<vmem>>, vector<1x8x8xbf16>
    %16 = vector.shape_cast %15 : vector<1x8x8xbf16> to vector<8x8xbf16>
    %cst_19 = arith.constant dense<0.000000e+00> : vector<8x81xf32>
    %17 = tpu.matmul %16, %14, %cst_19 {dimension_numbers = #tpu.dot_dimension_numbers<[1], [0], [0], [1], [0, 0, 1, 1], [], []>} : vector<8x8xbf16>, vector<8x81xbf16>, vector<8x81xf32> -> vector<8x81xf32>
    %18 = arith.addf %12, %17 : vector<8x81xf32>
    %c0_20 = arith.constant 0 : index
    %c0_21 = arith.constant 0 : index
    %c0_22 = arith.constant 0 : index
    %c10 = arith.constant 10 : index
    %19 = vector.load %arg1[%c0_20, %c0_21, %c0_22, %c10] : memref<1x4x8x91xbf16, #tpu.memory_space<vmem>>, vector<1x1x8x81xbf16>
    %20 = vector.shape_cast %19 : vector<1x1x8x81xbf16> to vector<8x81xbf16>
    %c3 = arith.constant 3 : index
    %c0_23 = arith.constant 0 : index
    %c0_24 = arith.constant 0 : index
    %21 = vector.load %arg2[%c3, %c0_23, %c0_24] : memref<16x8x8xbf16, #tpu.memory_space<vmem>>, vector<1x8x8xbf16>
    %22 = vector.shape_cast %21 : vector<1x8x8xbf16> to vector<8x8xbf16>
    %cst_25 = arith.constant dense<0.000000e+00> : vector<8x81xf32>
    %23 = tpu.matmul %22, %20, %cst_25 {dimension_numbers = #tpu.dot_dimension_numbers<[1], [0], [0], [1], [0, 0, 1, 1], [], []>} : vector<8x8xbf16>, vector<8x81xbf16>, vector<8x81xf32> -> vector<8x81xf32>
    %24 = arith.addf %18, %23 : vector<8x81xf32>
    %c0_26 = arith.constant 0 : index
    %c1_27 = arith.constant 1 : index
    %c0_28 = arith.constant 0 : index
    %c0_29 = arith.constant 0 : index
    %25 = vector.load %arg1[%c0_26, %c1_27, %c0_28, %c0_29] : memref<1x4x8x91xbf16, #tpu.memory_space<vmem>>, vector<1x1x8x81xbf16>
    %26 = vector.shape_cast %25 : vector<1x1x8x81xbf16> to vector<8x81xbf16>
    %c4 = arith.constant 4 : index
    %c0_30 = arith.constant 0 : index
    %c0_31 = arith.constant 0 : index
    %27 = vector.load %arg2[%c4, %c0_30, %c0_31] : memref<16x8x8xbf16, #tpu.memory_space<vmem>>, vector<1x8x8xbf16>
    %28 = vector.shape_cast %27 : vector<1x8x8xbf16> to vector<8x8xbf16>
    %cst_32 = arith.constant dense<0.000000e+00> : vector<8x81xf32>
    %29 = tpu.matmul %28, %26, %cst_32 {dimension_numbers = #tpu.dot_dimension_numbers<[1], [0], [0], [1], [0, 0, 1, 1], [], []>} : vector<8x8xbf16>, vector<8x81xbf16>, vector<8x81xf32> -> vector<8x81xf32>
    %30 = arith.addf %24, %29 : vector<8x81xf32>
    %c0_33 = arith.constant 0 : index
    %c1_34 = arith.constant 1 : index
    %c0_35 = arith.constant 0 : index
    %c1_36 = arith.constant 1 : index
    %31 = vector.load %arg1[%c0_33, %c1_34, %c0_35, %c1_36] : memref<1x4x8x91xbf16, #tpu.memory_space<vmem>>, vector<1x1x8x81xbf16>
    %32 = vector.shape_cast %31 : vector<1x1x8x81xbf16> to vector<8x81xbf16>
    %c5 = arith.constant 5 : index
    %c0_37 = arith.constant 0 : index
    %c0_38 = arith.constant 0 : index
    %33 = vector.load %arg2[%c5, %c0_37, %c0_38] : memref<16x8x8xbf16, #tpu.memory_space<vmem>>, vector<1x8x8xbf16>
    %34 = vector.shape_cast %33 : vector<1x8x8xbf16> to vector<8x8xbf16>
    %cst_39 = arith.constant dense<0.000000e+00> : vector<8x81xf32>
    %35 = tpu.matmul %34, %32, %cst_39 {dimension_numbers = #tpu.dot_dimension_numbers<[1], [0], [0], [1], [0, 0, 1, 1], [], []>} : vector<8x8xbf16>, vector<8x81xbf16>, vector<8x81xf32> -> vector<8x81xf32>
    %36 = arith.addf %30, %35 : vector<8x81xf32>
    %c0_40 = arith.constant 0 : index
    %c1_41 = arith.constant 1 : index
    %c0_42 = arith.constant 0 : index
    %c9_43 = arith.constant 9 : index
    %37 = vector.load %arg1[%c0_40, %c1_41, %c0_42, %c9_43] : memref<1x4x8x91xbf16, #tpu.memory_space<vmem>>, vector<1x1x8x81xbf16>
    %38 = vector.shape_cast %37 : vector<1x1x8x81xbf16> to vector<8x81xbf16>
    %c6 = arith.constant 6 : index
    %c0_44 = arith.constant 0 : index
    %c0_45 = arith.constant 0 : index
    %39 = vector.load %arg2[%c6, %c0_44, %c0_45] : memref<16x8x8xbf16, #tpu.memory_space<vmem>>, vector<1x8x8xbf16>
    %40 = vector.shape_cast %39 : vector<1x8x8xbf16> to vector<8x8xbf16>
    %cst_46 = arith.constant dense<0.000000e+00> : vector<8x81xf32>
    %41 = tpu.matmul %40, %38, %cst_46 {dimension_numbers = #tpu.dot_dimension_numbers<[1], [0], [0], [1], [0, 0, 1, 1], [], []>} : vector<8x8xbf16>, vector<8x81xbf16>, vector<8x81xf32> -> vector<8x81xf32>
    %42 = arith.addf %36, %41 : vector<8x81xf32>
    %c0_47 = arith.constant 0 : index
    %c1_48 = arith.constant 1 : index
    %c0_49 = arith.constant 0 : index
    %c10_50 = arith.constant 10 : index
    %43 = vector.load %arg1[%c0_47, %c1_48, %c0_49, %c10_50] : memref<1x4x8x91xbf16, #tpu.memory_space<vmem>>, vector<1x1x8x81xbf16>
    %44 = vector.shape_cast %43 : vector<1x1x8x81xbf16> to vector<8x81xbf16>
    %c7 = arith.constant 7 : index
    %c0_51 = arith.constant 0 : index
    %c0_52 = arith.constant 0 : index
    %45 = vector.load %arg2[%c7, %c0_51, %c0_52] : memref<16x8x8xbf16, #tpu.memory_space<vmem>>, vector<1x8x8xbf16>
    %46 = vector.shape_cast %45 : vector<1x8x8xbf16> to vector<8x8xbf16>
    %cst_53 = arith.constant dense<0.000000e+00> : vector<8x81xf32>
    %47 = tpu.matmul %46, %44, %cst_53 {dimension_numbers = #tpu.dot_dimension_numbers<[1], [0], [0], [1], [0, 0, 1, 1], [], []>} : vector<8x8xbf16>, vector<8x81xbf16>, vector<8x81xf32> -> vector<8x81xf32>
    %48 = arith.addf %42, %47 : vector<8x81xf32>
    %c0_54 = arith.constant 0 : index
    %c2_55 = arith.constant 2 : index
    %c0_56 = arith.constant 0 : index
    %c0_57 = arith.constant 0 : index
    %49 = vector.load %arg1[%c0_54, %c2_55, %c0_56, %c0_57] : memref<1x4x8x91xbf16, #tpu.memory_space<vmem>>, vector<1x1x8x81xbf16>
    %50 = vector.shape_cast %49 : vector<1x1x8x81xbf16> to vector<8x81xbf16>
    %c8 = arith.constant 8 : index
    %c0_58 = arith.constant 0 : index
    %c0_59 = arith.constant 0 : index
    %51 = vector.load %arg2[%c8, %c0_58, %c0_59] : memref<16x8x8xbf16, #tpu.memory_space<vmem>>, vector<1x8x8xbf16>
    %52 = vector.shape_cast %51 : vector<1x8x8xbf16> to vector<8x8xbf16>
    %cst_60 = arith.constant dense<0.000000e+00> : vector<8x81xf32>
    %53 = tpu.matmul %52, %50, %cst_60 {dimension_numbers = #tpu.dot_dimension_numbers<[1], [0], [0], [1], [0, 0, 1, 1], [], []>} : vector<8x8xbf16>, vector<8x81xbf16>, vector<8x81xf32> -> vector<8x81xf32>
    %54 = arith.addf %48, %53 : vector<8x81xf32>
    %c0_61 = arith.constant 0 : index
    %c2_62 = arith.constant 2 : index
    %c0_63 = arith.constant 0 : index
    %c1_64 = arith.constant 1 : index
    %55 = vector.load %arg1[%c0_61, %c2_62, %c0_63, %c1_64] : memref<1x4x8x91xbf16, #tpu.memory_space<vmem>>, vector<1x1x8x81xbf16>
    %56 = vector.shape_cast %55 : vector<1x1x8x81xbf16> to vector<8x81xbf16>
    %c9_65 = arith.constant 9 : index
    %c0_66 = arith.constant 0 : index
    %c0_67 = arith.constant 0 : index
    %57 = vector.load %arg2[%c9_65, %c0_66, %c0_67] : memref<16x8x8xbf16, #tpu.memory_space<vmem>>, vector<1x8x8xbf16>
    %58 = vector.shape_cast %57 : vector<1x8x8xbf16> to vector<8x8xbf16>
    %cst_68 = arith.constant dense<0.000000e+00> : vector<8x81xf32>
    %59 = tpu.matmul %58, %56, %cst_68 {dimension_numbers = #tpu.dot_dimension_numbers<[1], [0], [0], [1], [0, 0, 1, 1], [], []>} : vector<8x8xbf16>, vector<8x81xbf16>, vector<8x81xf32> -> vector<8x81xf32>
    %60 = arith.addf %54, %59 : vector<8x81xf32>
    %c0_69 = arith.constant 0 : index
    %c2_70 = arith.constant 2 : index
    %c0_71 = arith.constant 0 : index
    %c9_72 = arith.constant 9 : index
    %61 = vector.load %arg1[%c0_69, %c2_70, %c0_71, %c9_72] : memref<1x4x8x91xbf16, #tpu.memory_space<vmem>>, vector<1x1x8x81xbf16>
    %62 = vector.shape_cast %61 : vector<1x1x8x81xbf16> to vector<8x81xbf16>
    %c10_73 = arith.constant 10 : index
    %c0_74 = arith.constant 0 : index
    %c0_75 = arith.constant 0 : index
    %63 = vector.load %arg2[%c10_73, %c0_74, %c0_75] : memref<16x8x8xbf16, #tpu.memory_space<vmem>>, vector<1x8x8xbf16>
    %64 = vector.shape_cast %63 : vector<1x8x8xbf16> to vector<8x8xbf16>
    %cst_76 = arith.constant dense<0.000000e+00> : vector<8x81xf32>
    %65 = tpu.matmul %64, %62, %cst_76 {dimension_numbers = #tpu.dot_dimension_numbers<[1], [0], [0], [1], [0, 0, 1, 1], [], []>} : vector<8x8xbf16>, vector<8x81xbf16>, vector<8x81xf32> -> vector<8x81xf32>
    %66 = arith.addf %60, %65 : vector<8x81xf32>
    %c0_77 = arith.constant 0 : index
    %c2_78 = arith.constant 2 : index
    %c0_79 = arith.constant 0 : index
    %c10_80 = arith.constant 10 : index
    %67 = vector.load %arg1[%c0_77, %c2_78, %c0_79, %c10_80] : memref<1x4x8x91xbf16, #tpu.memory_space<vmem>>, vector<1x1x8x81xbf16>
    %68 = vector.shape_cast %67 : vector<1x1x8x81xbf16> to vector<8x81xbf16>
    %c11 = arith.constant 11 : index
    %c0_81 = arith.constant 0 : index
    %c0_82 = arith.constant 0 : index
    %69 = vector.load %arg2[%c11, %c0_81, %c0_82] : memref<16x8x8xbf16, #tpu.memory_space<vmem>>, vector<1x8x8xbf16>
    %70 = vector.shape_cast %69 : vector<1x8x8xbf16> to vector<8x8xbf16>
    %cst_83 = arith.constant dense<0.000000e+00> : vector<8x81xf32>
    %71 = tpu.matmul %70, %68, %cst_83 {dimension_numbers = #tpu.dot_dimension_numbers<[1], [0], [0], [1], [0, 0, 1, 1], [], []>} : vector<8x8xbf16>, vector<8x81xbf16>, vector<8x81xf32> -> vector<8x81xf32>
    %72 = arith.addf %66, %71 : vector<8x81xf32>
    %c0_84 = arith.constant 0 : index
    %c3_85 = arith.constant 3 : index
    %c0_86 = arith.constant 0 : index
    %c0_87 = arith.constant 0 : index
    %73 = vector.load %arg1[%c0_84, %c3_85, %c0_86, %c0_87] : memref<1x4x8x91xbf16, #tpu.memory_space<vmem>>, vector<1x1x8x81xbf16>
    %74 = vector.shape_cast %73 : vector<1x1x8x81xbf16> to vector<8x81xbf16>
    %c12 = arith.constant 12 : index
    %c0_88 = arith.constant 0 : index
    %c0_89 = arith.constant 0 : index
    %75 = vector.load %arg2[%c12, %c0_88, %c0_89] : memref<16x8x8xbf16, #tpu.memory_space<vmem>>, vector<1x8x8xbf16>
    %76 = vector.shape_cast %75 : vector<1x8x8xbf16> to vector<8x8xbf16>
    %cst_90 = arith.constant dense<0.000000e+00> : vector<8x81xf32>
    %77 = tpu.matmul %76, %74, %cst_90 {dimension_numbers = #tpu.dot_dimension_numbers<[1], [0], [0], [1], [0, 0, 1, 1], [], []>} : vector<8x8xbf16>, vector<8x81xbf16>, vector<8x81xf32> -> vector<8x81xf32>
    %78 = arith.addf %72, %77 : vector<8x81xf32>
    %c0_91 = arith.constant 0 : index
    %c3_92 = arith.constant 3 : index
    %c0_93 = arith.constant 0 : index
    %c1_94 = arith.constant 1 : index
    %79 = vector.load %arg1[%c0_91, %c3_92, %c0_93, %c1_94] : memref<1x4x8x91xbf16, #tpu.memory_space<vmem>>, vector<1x1x8x81xbf16>
    %80 = vector.shape_cast %79 : vector<1x1x8x81xbf16> to vector<8x81xbf16>
    %c13 = arith.constant 13 : index
    %c0_95 = arith.constant 0 : index
    %c0_96 = arith.constant 0 : index
    %81 = vector.load %arg2[%c13, %c0_95, %c0_96] : memref<16x8x8xbf16, #tpu.memory_space<vmem>>, vector<1x8x8xbf16>
    %82 = vector.shape_cast %81 : vector<1x8x8xbf16> to vector<8x8xbf16>
    %cst_97 = arith.constant dense<0.000000e+00> : vector<8x81xf32>
    %83 = tpu.matmul %82, %80, %cst_97 {dimension_numbers = #tpu.dot_dimension_numbers<[1], [0], [0], [1], [0, 0, 1, 1], [], []>} : vector<8x8xbf16>, vector<8x81xbf16>, vector<8x81xf32> -> vector<8x81xf32>
    %84 = arith.addf %78, %83 : vector<8x81xf32>
    %c0_98 = arith.constant 0 : index
    %c3_99 = arith.constant 3 : index
    %c0_100 = arith.constant 0 : index
    %c9_101 = arith.constant 9 : index
    %85 = vector.load %arg1[%c0_98, %c3_99, %c0_100, %c9_101] : memref<1x4x8x91xbf16, #tpu.memory_space<vmem>>, vector<1x1x8x81xbf16>
    %86 = vector.shape_cast %85 : vector<1x1x8x81xbf16> to vector<8x81xbf16>
    %c14 = arith.constant 14 : index
    %c0_102 = arith.constant 0 : index
    %c0_103 = arith.constant 0 : index
    %87 = vector.load %arg2[%c14, %c0_102, %c0_103] : memref<16x8x8xbf16, #tpu.memory_space<vmem>>, vector<1x8x8xbf16>
    %88 = vector.shape_cast %87 : vector<1x8x8xbf16> to vector<8x8xbf16>
    %cst_104 = arith.constant dense<0.000000e+00> : vector<8x81xf32>
    %89 = tpu.matmul %88, %86, %cst_104 {dimension_numbers = #tpu.dot_dimension_numbers<[1], [0], [0], [1], [0, 0, 1, 1], [], []>} : vector<8x8xbf16>, vector<8x81xbf16>, vector<8x81xf32> -> vector<8x81xf32>
    %90 = arith.addf %84, %89 : vector<8x81xf32>
    %c0_105 = arith.constant 0 : index
    %c3_106 = arith.constant 3 : index
    %c0_107 = arith.constant 0 : index
    %c10_108 = arith.constant 10 : index
    %91 = vector.load %arg1[%c0_105, %c3_106, %c0_107, %c10_108] : memref<1x4x8x91xbf16, #tpu.memory_space<vmem>>, vector<1x1x8x81xbf16>
    %92 = vector.shape_cast %91 : vector<1x1x8x81xbf16> to vector<8x81xbf16>
    %c15 = arith.constant 15 : index
    %c0_109 = arith.constant 0 : index
    %c0_110 = arith.constant 0 : index
    %93 = vector.load %arg2[%c15, %c0_109, %c0_110] : memref<16x8x8xbf16, #tpu.memory_space<vmem>>, vector<1x8x8xbf16>
    %94 = vector.shape_cast %93 : vector<1x8x8xbf16> to vector<8x8xbf16>
    %cst_111 = arith.constant dense<0.000000e+00> : vector<8x81xf32>
    %95 = tpu.matmul %94, %92, %cst_111 {dimension_numbers = #tpu.dot_dimension_numbers<[1], [0], [0], [1], [0, 0, 1, 1], [], []>} : vector<8x8xbf16>, vector<8x81xbf16>, vector<8x81xf32> -> vector<8x81xf32>
    %96 = arith.addf %90, %95 : vector<8x81xf32>
    %c0_112 = arith.constant 0 : index
    %c0_113 = arith.constant 0 : index
    %97 = vector.load %arg3[%c0_112, %c0_113] : memref<8x1xf32, #tpu.memory_space<vmem>>, vector<8x1xf32>
    %98 = vector.broadcast %97 : vector<8x1xf32> to vector<8x81xf32>
    %99 = arith.addf %96, %98 : vector<8x81xf32>
    %c0_114 = arith.constant 0 : index
    %c0_115 = arith.constant 0 : index
    %c0_116 = arith.constant 0 : index
    %100 = vector.load %arg4[%c0_114, %c0_115, %c0_116] : memref<1x8x81xf32, #tpu.memory_space<vmem>>, vector<1x8x81xf32>
    %101 = vector.shape_cast %100 : vector<1x8x81xf32> to vector<8x81xf32>
    %102 = vector.shape_cast %99 : vector<8x81xf32> to vector<1x8x81xf32>
    tpu.vector_store %arg4[%c0_114, %c0_115, %c0_116], %102 {strides = array<i32>} : memref<1x8x81xf32, #tpu.memory_space<vmem>>, vector<1x8x81xf32>,
    return
  }
  func.func @transform_0(%arg0: i32) -> (i32, i32, i32, i32) {
    %c0_i32 = arith.constant 0 : i32
    %c0_i32_0 = arith.constant 0 : i32
    %c0_i32_1 = arith.constant 0 : i32
    %c0_i32_2 = arith.constant 0 : i32
    return %arg0, %c0_i32, %c0_i32_0, %c0_i32_1 : i32, i32, i32, i32
  }
  func.func @transform_1(%arg0: i32) -> (i32, i32, i32) {
    %c0_i32 = arith.constant 0 : i32
    %c0_i32_0 = arith.constant 0 : i32
    %c0_i32_1 = arith.constant 0 : i32
    %c0_i32_2 = arith.constant 0 : i32
    return %c0_i32, %c0_i32_0, %c0_i32_1 : i32, i32, i32
  }
  func.func @transform_2(%arg0: i32) -> (i32, i32) {
    %c0_i32 = arith.constant 0 : i32
    %c0_i32_0 = arith.constant 0 : i32
    %c0_i32_1 = arith.constant 0 : i32
    return %c0_i32, %c0_i32_0 : i32, i32
  }
  func.func @transform_3(%arg0: i32) -> (i32, i32, i32) {
    %c0_i32 = arith.constant 0 : i32
    %c0_i32_0 = arith.constant 0 : i32
    %c0_i32_1 = arith.constant 0 : i32
    return %arg0, %c0_i32, %c0_i32_0 : i32, i32, i32
  }
}

</mosaic_0001>

<bundles_post_ra>
// kernel: pallas_forward.3
= control target key start
LH: loop header
LB: loop body
LE: loop exit
PB: predicated region body
PF: predicated region fallthrough
CT: control target
= control target key end

     0   :  { %s1288_s12 = smov 0   ;;  %s1450_s0 = inlined_call_operand.vmem [shape: bf16[2,4,8,91], index: 0, kind: input, shape index: {}]   ;;  %s1451_s1 = inlined_call_operand.vmem [shape: bf16[16,8,8], index: 1, kind: input, shape index: {}]   ;;  %s1452_s2 = inlined_call_operand.vmem [shape: f32[8,1], index: 2, kind: input, shape index: {}]   ;;  %s1453_s3 = inlined_call_operand.vmem [shape: f32[2,8,81], index: 3, kind: output, shape index: {}]  }
   0x1 LB: > { %s1058_s13 = sadd.s32 4294967295, %s1260_s12   ;;  %p1062_p0 = scmp.ge.s32.totalorder %s1260_s12, 1  ;;  %s1260_s12 = sphi %s1288_s12, %s13_s12  }
   0x2   : > { %p137_p1 = scmp.lt.s32.totalorder %s1260_s12, 3 }
   0x4   : > { %p138_p2 = pnand %p1062_p0, %p137_p1 }
   0x5   : > { %p160_p3 = scmp.lt.s32.totalorder (!%p138_p2), %s1058_s13, 1  ;;  %s1264_s20 = smov (!%p138_p2), 127  }
   0x6   : > { %141 = sbr.rel (%p138_p2) target bundleno = 392 (0x188), region = 32  ;;  %s1265_s21 = smov (!%p138_p2), 118  }
   0x7   : > { %s1266_s22 = smov (!%p138_p2), 119  }
   0xb   : > { %v1262_v0 = vmov 0.0   ;;  %vm1263_vm0 = vmmov 0   ;;  %s1455_s13 = smov (!%p160_p3, %s1058_s13), 1  ;;  %vm183_vm1 = vcmask 1043456   ;;  %v171_v5 = vld [vmem:[%s1451_s1] sm:$0xf] }
   0xc   : > { %1145 = vmatprep.subr.bf16.mxu1 %v1262_v0  ;;  %1147 = vmatprep.mubr.msk.bf16.mxu1 %vm1263_vm0, %v1262_v0  ;;  %s1106_s14 = sshll.u32 %s1455_s13, 4  ;;  %vm179_vm2 = vcmask 64512   ;;  %v996_v11 = vld [vmem:[%s1452_s2] sm:$0xff]  ;;  %v1267_v12 = vmov 0   ;;  %v1072_v18 = vld [vmem:[%s1451_s1 + $0xc] sm:$0xf] }
   0xd   : > { %1139 = vmatprep.subr.bf16.mxu0 %v1262_v0  ;;  %1141 = vmatprep.mubr.msk.bf16.mxu0 %vm1263_vm0, %v1262_v0  ;;  %s164_s17 = scalar_lea.vmem %s1450_s0, %s1106_s14  ;;  %v1066_v17 = vld [vmem:[%s1451_s1 + $0x4] sm:$0xf]  ;;  %v1070_v24 = vld [vmem:[%s1451_s1 + $0x8] sm:$0xf]  ;;  %v1077_v25 = vld [vmem:[%s1451_s1 + $0x14] sm:$0xf] }
   0xe   : > { %v170_v1 = vld [vmem:[%s164_s17] sm:$0xf]  ;;  %v1074_v2 = vld [vmem:[%s164_s17 + $0x4] sm:$0xf]  ;;  %v1316_v7 = vld [vmem:[%s164_s17 + $0x8] sm:$0xf]  ;;  %1249 = vset.pattern.permute.xlu0 %v1267_v12 }
   0xf   : > { %v1067_v3 = vcombine.low %v170_v1, %v170_v1  ;;  %v231_v4 = vsel %vm183_vm1, %v170_v1, 0  ;;  %v1078_v6 = vcombine.low %v1074_v2, %v1074_v2  ;;  %v1088_v8 = vcombine.low %v1316_v7, %v1316_v7  ;;  %v1320_v9 = vld [vmem:[%s164_s17 + $0xc] sm:$0xf]  ;;  %v1075_v30 = vld [vmem:[%s1451_s1 + $0x10] sm:$0xf]  ;;  %s1065_s30 = sshll.u32 %s1455_s13, 3 }
  0x10   : > { %1146 = vmatpush3.bf16.msra.mxu1 %v231_v4  ;;  %v1098_v10 = vcombine.low %v1320_v9, %v1320_v9  ;;  %v383_v26 = vsel %vm183_vm1, %v1074_v2, 0  ;;  %v1082_v31 = vld [vmem:[%s1451_s1 + $0x1c] sm:$0xf]  ;;  %v1080_v35 = vld [vmem:[%s1451_s1 + $0x18] sm:$0xf]  ;;  %v590_v37 = vsel %vm183_vm1, %v1316_v7, 0  ;;  %s168_s6 = scalar_lea.vmem %s1453_s3, %s1065_s30 }
  0x11   : > { %177 = vrot.lane.b32.xlu0 %v1067_v3, %s1264_s20  ;;  %326 = vrot.lane.b32.xlu1 %v1067_v3, %s1265_s21  ;;  %v1087_v36 = vld [vmem:[%s1451_s1 + $0x24] sm:$0xf]  ;;  %v1085_v41 = vld [vmem:[%s1451_s1 + $0x20] sm:$0xf]  ;;  %v797_v48 = vsel %vm183_vm1, %v1320_v9, 0  ;;  %vm1003_vm3 = vcmask 662528  }
  0x12   : > { %1157 = vmatprep.subr.bf16.mxu1 %v1262_v0  ;;  %v1092_v42 = vld [vmem:[%s1451_s1 + $0x2c] sm:$0xf]  ;;  %v1090_v46 = vld [vmem:[%s1451_s1 + $0x28] sm:$0xf]  ;;  %v1097_v47 = vld [vmem:[%s1451_s1 + $0x34] sm:$0xf] }
  0x13   : > { %1148 = vmatmul.mubr.msk.bf16.vlgmr.msra.gmra.mxu1 %vm179_vm2, %v171_v5  ;;  %v1095_v51 = vld [vmem:[%s1451_s1 + $0x30] sm:$0xf]  ;;  %v1102_v52 = vld [vmem:[%s1451_s1 + $0x3c] sm:$0xf]  ;;  %v1100_v54 = vld [vmem:[%s1451_s1 + $0x38] sm:$0xf] }
  0x14   : > { %1159 = vmatprep.mubr.msk.bf16.mxu1 %vm1263_vm0, %v1262_v0 }
  0x15   : > { %275 = vrot.lane.b32.xlu0 %v1067_v3, %s1266_s22  ;;  %431 = vrot.lane.b32.xlu1 %v1078_v6, %s1264_s20 }
  0x19   : > { %533 = vrot.lane.b32.xlu1 %v1078_v6, %s1265_s21  ;;  %482 = vrot.lane.b32.xlu0 %v1078_v6, %s1266_s22 }
  0x1d   : > { %638 = vrot.lane.b32.xlu0 %v1088_v8, %s1264_s20  ;;  %689 = vrot.lane.b32.xlu1 %v1088_v8, %s1266_s22 }
  0x21   : > { %740 = vrot.lane.b32.xlu0 %v1088_v8, %s1265_s21  ;;  %845 = vrot.lane.b32.xlu1 %v1098_v10, %s1264_s20 }
  0x25   : > { %947 = vrot.lane.b32.xlu1 %v1098_v10, %s1265_s21  ;;  %896 = vrot.lane.b32.xlu0 %v1098_v10, %s1266_s22 }
  0x29   : > { %999 = vperm.xlu0 %1249, %v996_v11  }
  0x83   : > { %v178_v13 = vpop.permute.xlu0 %177  ;;  %v327_v14 = vpop.permute.xlu1 %326 }
  0x84   : > { %v185_v15 = vsel %vm183_vm1, %v178_v13, 0  ;;  %v332_v16 = vsel %vm183_vm1, %v327_v14, 0 }
  0x85   : > { %1140 = vmatpush3.bf16.msra.mxu0 %v185_v15  ;;  %1158 = vmatpush3.bf16.msra.mxu1 %v332_v16 }
  0x86   : > { %1151 = vmatprep.subr.bf16.mxu0 %v1262_v0  ;;  %1169 = vmatprep.subr.bf16.mxu1 %v1262_v0 }
  0x87   : > { %v276_v19 = vpop.permute.xlu0 %275  ;;  %v432_v20 = vpop.permute.xlu1 %431 }
  0x88   : > { %v281_v21 = vsel %vm183_vm1, %v276_v19, 0  ;;  %1142 = vmatmul.mubr.msk.bf16.vlgmr.msra.gmra.mxu0 %vm179_vm2, %v1066_v17  ;;  %1160 = vmatmul.mubr.msk.bf16.vlgmr.msra.gmra.mxu1 %vm179_vm2, %v1072_v18  ;;  %v437_v22 = vsel %vm183_vm1, %v432_v20, 0 }
  0x89   : > { %1152 = vmatpush3.bf16.msra.mxu0 %v281_v21  ;;  %1153 = vmatprep.mubr.msk.bf16.mxu0 %vm1263_vm0, %v1262_v0 }
  0x8a   : > { %1163 = vmatprep.subr.bf16.mxu0 %v1262_v0  ;;  %1170 = vmatpush3.bf16.msra.mxu1 %v437_v22 }
  0x8b   : > { %1171 = vmatprep.mubr.msk.bf16.mxu1 %vm1263_vm0, %v1262_v0  ;;  %1181 = vmatprep.subr.bf16.mxu1 %v1262_v0  ;;  %v534_v23 = vpop.permute.xlu1 %533  ;;  %v483_v27 = vpop.permute.xlu0 %482 }
  0x8c   : > { %v539_v28 = vsel %vm183_vm1, %v534_v23, 0  ;;  %v488_v32 = vsel %vm183_vm1, %v483_v27, 0 }
  0x8f   : > { %v639_v29 = vpop.permute.xlu0 %638  ;;  %v690_v38 = vpop.permute.xlu1 %689 }
  0x90   : > { %1154 = vmatmul.mubr.msk.bf16.vlgmr.msra.gmra.mxu0 %vm179_vm2, %v1070_v24  ;;  %1172 = vmatmul.mubr.msk.bf16.vlgmr.msra.gmra.mxu1 %vm179_vm2, %v1077_v25  ;;  %v644_v33 = vsel %vm183_vm1, %v639_v29, 0  ;;  %v695_v43 = vsel %vm183_vm1, %v690_v38, 0 }
  0x91   : > { %1164 = vmatpush3.bf16.msra.mxu0 %v383_v26  ;;  %1165 = vmatprep.mubr.msk.bf16.mxu0 %vm1263_vm0, %v1262_v0 }
  0x92   : > { %1175 = vmatprep.subr.bf16.mxu0 %v1262_v0  ;;  %1182 = vmatpush3.bf16.msra.mxu1 %v539_v28 }
  0x93   : > { %1183 = vmatprep.mubr.msk.bf16.mxu1 %vm1263_vm0, %v1262_v0  ;;  %1193 = vmatprep.subr.bf16.mxu1 %v1262_v0  ;;  %v741_v34 = vpop.permute.xlu0 %740  ;;  %v846_v40 = vpop.permute.xlu1 %845 }
  0x94   : > { %v746_v39 = vsel %vm183_vm1, %v741_v34, 0  ;;  %v851_v44 = vsel %vm183_vm1, %v846_v40, 0 }
  0x97   : > { %v948_v45 = vpop.permute.xlu1 %947  ;;  %v897_v50 = vpop.permute.xlu0 %896 }
  0x98   : > { %1166 = vmatmul.mubr.msk.bf16.vlgmr.msra.gmra.mxu0 %vm179_vm2, %v1075_v30  ;;  %1184 = vmatmul.mubr.msk.bf16.vlgmr.msra.gmra.mxu1 %vm179_vm2, %v1082_v31  ;;  %v953_v49 = vsel %vm183_vm1, %v948_v45, 0  ;;  %v902_v53 = vsel %vm183_vm1, %v897_v50, 0 }
  0x99   : > { %1176 = vmatpush3.bf16.msra.mxu0 %v488_v32  ;;  %1177 = vmatprep.mubr.msk.bf16.mxu0 %vm1263_vm0, %v1262_v0 }
  0x9a   : > { %1187 = vmatprep.subr.bf16.mxu0 %v1262_v0  ;;  %1194 = vmatpush3.bf16.msra.mxu1 %v644_v33 }
  0x9b   : > { %1195 = vmatprep.mubr.msk.bf16.mxu1 %vm1263_vm0, %v1262_v0  ;;  %1205 = vmatprep.subr.bf16.mxu1 %v1262_v0 }
  0xa0   : > { %1178 = vmatmul.mubr.msk.bf16.vlgmr.msra.gmra.mxu0 %vm179_vm2, %v1080_v35  ;;  %1196 = vmatmul.mubr.msk.bf16.vlgmr.msra.gmra.mxu1 %vm179_vm2, %v1087_v36 }
  0xa1   : > { %1188 = vmatpush3.bf16.msra.mxu0 %v590_v37  ;;  %1189 = vmatprep.mubr.msk.bf16.mxu0 %vm1263_vm0, %v1262_v0 }
  0xa2   : > { %1199 = vmatprep.subr.bf16.mxu0 %v1262_v0  ;;  %1206 = vmatpush3.bf16.msra.mxu1 %v746_v39 }
  0xa3   : > { %1207 = vmatprep.mubr.msk.bf16.mxu1 %vm1263_vm0, %v1262_v0  ;;  %1217 = vmatprep.subr.bf16.mxu1 %v1262_v0 }
  0xa8   : > { %1190 = vmatmul.mubr.msk.bf16.vlgmr.msra.gmra.mxu0 %vm179_vm2, %v1085_v41  ;;  %1208 = vmatmul.mubr.msk.bf16.vlgmr.msra.gmra.mxu1 %vm179_vm2, %v1092_v42 }
  0xa9   : > { %1200 = vmatpush3.bf16.msra.mxu0 %v695_v43  ;;  %1201 = vmatprep.mubr.msk.bf16.mxu0 %vm1263_vm0, %v1262_v0 }
  0xaa   : > { %1211 = vmatprep.subr.bf16.mxu0 %v1262_v0  ;;  %1218 = vmatpush3.bf16.msra.mxu1 %v851_v44 }
  0xab   : > { %1219 = vmatprep.mubr.msk.bf16.mxu1 %vm1263_vm0, %v1262_v0  ;;  %1229 = vmatprep.subr.bf16.mxu1 %v1262_v0 }
  0xb0   : > { %1202 = vmatmul.mubr.msk.bf16.vlgmr.msra.gmra.mxu0 %vm179_vm2, %v1090_v46  ;;  %1220 = vmatmul.mubr.msk.bf16.vlgmr.msra.gmra.mxu1 %vm179_vm2, %v1097_v47 }
  0xb1   : > { %1212 = vmatpush3.bf16.msra.mxu0 %v797_v48  ;;  %1213 = vmatprep.mubr.msk.bf16.mxu0 %vm1263_vm0, %v1262_v0 }
  0xb2   : > { %1223 = vmatprep.subr.bf16.mxu0 %v1262_v0  ;;  %1230 = vmatpush3.bf16.msra.mxu1 %v953_v49 }
  0xb3   : > { %1231 = vmatprep.mubr.msk.bf16.mxu1 %vm1263_vm0, %v1262_v0 }
  0xb8   : > { %1214 = vmatmul.mubr.msk.bf16.vlgmr.msra.gmra.mxu0 %vm179_vm2, %v1095_v51  ;;  %1232 = vmatmul.mubr.msk.bf16.vlgmr.msra.gmra.mxu1 %vm179_vm2, %v1102_v52 }
  0xb9   : > { %1224 = vmatpush3.bf16.msra.mxu0 %v902_v53  ;;  %1225 = vmatprep.mubr.msk.bf16.mxu0 %vm1263_vm0, %v1262_v0 }
  0xc0   : > { %1226 = vmatmul.mubr.msk.bf16.vlgmr.msra.gmra.mxu0 %vm179_vm2, %v1100_v54 }
  0xd3   : > { %v267_v55 = vpop.f32.mrf.mxu1 }
  0xd5   : > { %v1149_v56 = vpop.f32.mrf.mxu1 }
  0xd7   : > { %v270_v57 = vpop.f32.mrf.mxu1 }
  0xd9   : > { %v1150_v58 = vpop.f32.mrf.mxu1 }
 0x148   : > { %v221_v59 = vpop.f32.mrf.mxu0  ;;  %v368_v60 = vpop.f32.mrf.mxu1 }
 0x149   : > { %v268_v15 = vadd.f32 %v267_v55, %v221_v59 }
 0x14a   : > { %v1143_v61 = vpop.f32.mrf.mxu0  ;;  %v1161_v62 = vpop.f32.mrf.mxu1 }
 0x14c   : > { %v224_v63 = vpop.f32.mrf.mxu0  ;;  %v371_v1 = vpop.f32.mrf.mxu1 }
 0x14e   : > { %v1144_v2 = vpop.f32.mrf.mxu0  ;;  %v1162_v3 = vpop.f32.mrf.mxu1 }
 0x150   : > { %v317_v4 = vpop.f32.mrf.mxu0  ;;  %v473_v0 = vpop.f32.mrf.mxu1 }
 0x151   : > { %v323_v18 = vadd.f32 %v317_v4, %v268_v15  ;;  %v1000_v4 = vpop.permute.xlu0 %999 }
 0x152   : > { %v1155_v5 = vpop.f32.mrf.mxu0  ;;  %v1173_v6 = vpop.f32.mrf.mxu1 }
 0x153   : > { %v374_v23 = vadd.f32 %v368_v60, %v323_v18 }
 0x154   : > { %v320_v7 = vpop.f32.mrf.mxu0  ;;  %v476_v8 = vpop.f32.mrf.mxu1 }
 0x156   : > { %v1156_v9 = vpop.f32.mrf.mxu0  ;;  %v1174_v10 = vpop.f32.mrf.mxu1 }
 0x158   : > { %v419_v11 = vpop.f32.mrf.mxu0  ;;  %v575_v12 = vpop.f32.mrf.mxu1 }
 0x159   : > { %v425_v26 = vadd.f32 %v419_v11, %v374_v23 }
 0x15a   : > { %v1167_v13 = vpop.f32.mrf.mxu0  ;;  %v1185_v14 = vpop.f32.mrf.mxu1 }
 0x15b   : > { %v479_v31 = vadd.f32 %v473_v0, %v425_v26 }
 0x15c   : > { %v422_v16 = vpop.f32.mrf.mxu0  ;;  %v578_v17 = vpop.f32.mrf.mxu1 }
 0x15e   : > { %v1168_v19 = vpop.f32.mrf.mxu0  ;;  %v1186_v20 = vpop.f32.mrf.mxu1 }
 0x160   : > { %v524_v21 = vpop.f32.mrf.mxu0  ;;  %v680_v22 = vpop.f32.mrf.mxu1 }
 0x161   : > { %v530_v34 = vadd.f32 %v524_v21, %v479_v31 }
 0x162   : > { %v1179_v24 = vpop.f32.mrf.mxu0  ;;  %v1197_v25 = vpop.f32.mrf.mxu1 }
 0x163   : > { %v581_v39 = vadd.f32 %v575_v12, %v530_v34 }
 0x164   : > { %v527_v27 = vpop.f32.mrf.mxu0  ;;  %v683_v28 = vpop.f32.mrf.mxu1 }
 0x166   : > { %v1180_v29 = vpop.f32.mrf.mxu0  ;;  %v1198_v30 = vpop.f32.mrf.mxu1 }
 0x168   : > { %v626_v32 = vpop.f32.mrf.mxu0  ;;  %v782_v33 = vpop.f32.mrf.mxu1 }
 0x169   : > { %v632_v42 = vadd.f32 %v626_v32, %v581_v39 }
 0x16a   : > { %v1191_v35 = vpop.f32.mrf.mxu0  ;;  %v1209_v36 = vpop.f32.mrf.mxu1 }
 0x16b   : > { %v686_v47 = vadd.f32 %v680_v22, %v632_v42 }
 0x16c   : > { %v629_v37 = vpop.f32.mrf.mxu0  ;;  %v785_v38 = vpop.f32.mrf.mxu1 }
 0x16e   : > { %v1192_v40 = vpop.f32.mrf.mxu0  ;;  %v1210_v41 = vpop.f32.mrf.mxu1 }
 0x170   : > { %v731_v43 = vpop.f32.mrf.mxu0  ;;  %v887_v44 = vpop.f32.mrf.mxu1 }
 0x171   : > { %v737_v50 = vadd.f32 %v731_v43, %v686_v47 }
 0x172   : > { %v1203_v45 = vpop.f32.mrf.mxu0  ;;  %v1221_v46 = vpop.f32.mrf.mxu1 }
 0x173   : > { %v788_v55 = vadd.f32 %v782_v33, %v737_v50 }
 0x174   : > { %v734_v48 = vpop.f32.mrf.mxu0  ;;  %v890_v49 = vpop.f32.mrf.mxu1 }
 0x176   : > { %v1204_v51 = vpop.f32.mrf.mxu0  ;;  %v1222_v52 = vpop.f32.mrf.mxu1 }
 0x178   : > { %v833_v53 = vpop.f32.mrf.mxu0  ;;  %v989_v54 = vpop.f32.mrf.mxu1 }
 0x179   : > { %v839_v58 = vadd.f32 %v833_v53, %v788_v55 }
 0x17a   : > { %v1215_v56 = vpop.f32.mrf.mxu0  ;;  %v1233_v57 = vpop.f32.mrf.mxu1 }
 0x17b   : > { %v893_v63 = vadd.f32 %v887_v44, %v839_v58 }
 0x17c   : > { %v836_v59 = vpop.f32.mrf.mxu0  ;;  %v992_v60 = vpop.f32.mrf.mxu1 }
 0x17e   : > { %v1216_v61 = vpop.f32.mrf.mxu0  ;;  %v1234_v62 = vpop.f32.mrf.mxu1 }
 0x180   : > { %v938_v1 = vpop.f32.mrf.mxu0 }
 0x181   : > { %v944_v2 = vadd.f32 %v938_v1, %v893_v63 }
 0x182   : > { %v1227_v3 = vpop.f32.mrf.mxu0 }
 0x183   : > { %v995_v0 = vadd.f32 %v989_v54, %v944_v2 }
 0x184   : > { %v941_v5 = vpop.f32.mrf.mxu0 }
 0x185   : > { %v1002_v6 = vadd.f32 %v1000_v4, %v995_v0 }
 0x186   : > { %v1228_v7 = vpop.f32.mrf.mxu0 }
 0x187   : > { %1004 = vst.msk [vmem:[%s168_s6] sm:$0xff] %vm1003_vm3, %v1002_v6 }
 0x188 PF: > { %s13_s12 = sadd.s32 1, %s1260_s12  }
 0x189   : > { %p10_p4 = scmp.ge.s32.totalorder %s13_s12, 4  }
 0x18b   :  { %12 = sbr.rel (!%p10_p4) target bundleno = 1 (0x1), region = 80 }

// kernel: pallas_forward.2
= control target key start
LH: loop header
LB: loop body
LE: loop exit
PB: predicated region body
PF: predicated region fallthrough
CT: control target
= control target key end

     0   :  { %s2842_s24 = smov 0   ;;  %s3236_s0 = inlined_call_operand.vmem [shape: bf16[2,4,362], index: 0, kind: input, shape index: {}]   ;;  %s3237_s1 = inlined_call_operand.vmem [shape: bf16[9,8,4], index: 1, kind: input, shape index: {}]   ;;  %s3238_s2 = inlined_call_operand.vmem [shape: f32[8,1], index: 2, kind: input, shape index: {}]   ;;  %s3239_s3 = inlined_call_operand.vmem [shape: f32[2,8,1], index: 3, kind: input, shape index: {}]   ;;  %s3240_s4 = inlined_call_operand.vmem [shape: bf16[9,8,8], index: 4, kind: input, shape index: {}]   ;;  %s3241_s5 = inlined_call_operand.vmem [shape: f32[8,1], index: 5, kind: input, shape index: {}]   ;;  %s3242_s6 = inlined_call_operand.vmem [shape: f32[1,324], index: 6, kind: input, shape index: {}]   ;;  %s3243_s7 = inlined_call_operand.vmem [shape: bf16[2,8,324], index: 7, kind: output, shape index: {}]  }
   0x1 LB: > { %s2510_s25 = sadd.s32 4294967295, %s2787_s24   ;;  %p2514_p0 = scmp.ge.s32.totalorder %s2787_s24, 1  ;;  %s2787_s24 = sphi %s2842_s24, %s17_s24  }
   0x2   : > { %p246_p1 = scmp.lt.s32.totalorder %s2787_s24, 3 }
   0x4   : > { %p247_p2 = pnand %p2514_p0, %p246_p1 }
   0x5   : > { %p282_p3 = scmp.lt.s32.totalorder (!%p247_p2), %s2510_s25, 1  ;;  %s2793_s30 = smov (!%p247_p2), 127  }
   0x6   : > { %250 = sbr.rel (%p247_p2) target bundleno = 937 (0x3a9), region = 48  ;;  %s2794_s8 = smov (!%p247_p2), 126  }
   0x7   : > { %s2795_s9 = smov (!%p247_p2), 110   ;;  %s2796_s10 = smov (!%p247_p2), 109  }
   0x8   : > { %s2797_s11 = smov (!%p247_p2), 108   ;;  %s2798_s12 = smov (!%p247_p2), 92  }
   0x9   : > { %s2799_s13 = smov (!%p247_p2), 91   ;;  %s2800_s14 = smov (!%p247_p2), 90  }
   0xa   : > { %s2801_s15 = smov (!%p247_p2), 19  }
   0xb   : > { %v307_v0 = vlaneseq  ;;  %v2789_v1 = vmov 1983009808   ;;  %v2790_v3 = vmov 0.0   ;;  %s3245_s25 = smov (!%p282_p3, %s2510_s25), 1  ;;  %vm2791_vm0 = vmmov 0   ;;  %v1391_v48 = vld [vmem:[%s3238_s2] sm:$0xff] }
   0xc   : > { %v305_v2 = vunpack.c.l.s4 %v2789_v1  ;;  %2637 = vmatprep.subr.bf16.mxu1 %v2790_v3  ;;  %2639 = vmatprep.mubr.msk.bf16.mxu1 %vm2791_vm0, %v2790_v3  ;;  %s2745_s26 = smul.u32 6, %s3245_s25  ;;  %v2792_v6 = vmov 0   ;;  %s2516_s17 = sshll.u32 %s3245_s25, 3  ;;  %vm332_vm1 = vcmask 1041408   ;;  %vm325_vm2 = vcmask 1039360  }
   0xd   : > { %v2853_v4 = vshrl.u32 %v307_v0, 7  ;;  %374 = vmatprep.mubr.bf16.mxu0 %v2792_v6  ;;  %1431 = vst [vmem:[#allocation2] sm:$0xff] %v2792_v6  ;;  %2768 = vset.pattern.permute.xlu0 %v2792_v6  ;;  %s290_s20 = scalar_lea.vmem %s3239_s3, %s2516_s17  ;;  %v2518_v54 = vld [vmem:[%s3237_s1 + $0x4] sm:$0xf]  ;;  %vm328_vm3 = vcmask 31744   ;;  %vm542_vm4 = vcmask 1031168  }
   0xe   : > { %v306_v5 = vunpack.c.0.s8 %v305_v2  ;;  %2769 = vset.pattern.permute.xlu1 %v2792_v6  ;;  %s2868_s29 = scalar_lea.vmem %s3236_s0, %s2745_s26  ;;  %v1403_v49 = vld [vmem:[%s290_s20] sm:$0xff]  ;;  %vm667_vm5 = vcmask 900096   ;;  %vm792_vm6 = vcmask 891904   ;;  %vm917_vm7 = vcmask 883712  }
   0xf   : > { %v298_v8 = vld [vmem:[%s2868_s29] sm:$0x3f]  ;;  %vm1042_vm8 = vcmask 752640   ;;  %vm1167_vm9 = vcmask 744448   ;;  %vm1292_vm10 = vcmask 736256   ;;  %vm1432_vm11 = vcmask 863232  }
  0x10   : > { %v2862_v7 = vsub.s32 %v306_v5, %v2853_v4  ;;  %v303_v10 = vcombine.high %v298_v8, %v298_v8  ;;  %v516_v11 = vld [vmem:[%s2868_s29] sm:$0x3f]  ;;  %1433 = vst.msk [vmem:[#allocation2 + $0x8] sm:$0xf] %vm1432_vm11, %v2792_v6  ;;  %vm1455_vm12 = vcmask 1043608   ;;  %vm1456_vm13 = vcmask 1047556  }
  0x11   : > { %v520_v15 = vcombine.high %v516_v11, %v516_v11  ;;  %v641_v17 = vld [vmem:[%s2868_s29] sm:$0x3f]  ;;  %vm1450_vm14 = vcmask 154624   ;;  %vm1457_vm15 = vmor %vm1456_vm13, %vm1455_vm12  ;;  %vm1482_vm11 = vcmask 64512  }
  0x12   : > { %v2872_v9 = vrot.slane %v298_v8, %v2862_v7  ;;  %v2878_v12 = vrot.slane %v303_v10, %v2862_v7  ;;  %v527_v14 = vrot.slane %v516_v11, %v2862_v7  ;;  %v652_v19 = vrot.slane %v641_v17, %v2862_v7  ;;  %v766_v22 = vld [vmem:[%s2868_s29] sm:$0x3f] }
  0x13   : > { %v534_v18 = vrot.slane %v520_v15, %v2862_v7  ;;  %v645_v20 = vcombine.high %v641_v17, %v641_v17  ;;  %v777_v24 = vrot.slane %v766_v22, %v2862_v7  ;;  %v770_v25 = vcombine.high %v766_v22, %v766_v22  ;;  %v891_v27 = vld [vmem:[%s2868_s29] sm:$0x3f] }
  0x14   : > { %319 = vrot.lane.b32.xlu0 %v2872_v9, %s2793_s30  ;;  %v2882_v13 = vcombine.high %v2872_v9, %v2872_v9  ;;  %323 = vrot.lane.b32.xlu1 %v2878_v12, %s2793_s30  ;;  %v535_v16 = vcombine.high %v527_v14, %v527_v14  ;;  %v660_v21 = vcombine.high %v652_v19, %v652_v19  ;;  %v1016_v32 = vld [vmem:[%s2868_s29] sm:$0x3f]  ;;  %v433_v57 = vsel %vm332_vm1, %v2878_v12, 0  ;;  %v2525_v12 = vld [vmem:[%s3237_s1 + $0x8] sm:$0xf] }
  0x15   : > { %v659_v23 = vrot.slane %v645_v20, %v2862_v7  ;;  %v785_v26 = vcombine.high %v777_v24, %v777_v24  ;;  %v784_v28 = vrot.slane %v770_v25, %v2862_v7  ;;  %v902_v29 = vrot.slane %v891_v27, %v2862_v7  ;;  %v1141_v37 = vld [vmem:[%s2868_s29] sm:$0x3f] }
  0x16   : > { %v895_v30 = vcombine.high %v891_v27, %v891_v27  ;;  %v1027_v34 = vrot.slane %v1016_v32, %v2862_v7  ;;  %v1020_v35 = vcombine.high %v1016_v32, %v1016_v32  ;;  %v1152_v39 = vrot.slane %v1141_v37, %v2862_v7  ;;  %v1266_v42 = vld [vmem:[%s2868_s29] sm:$0x3f] }
  0x17   : > { %v910_v31 = vcombine.high %v902_v29, %v902_v29  ;;  %v1145_v40 = vcombine.high %v1141_v37, %v1141_v37  ;;  %v1277_v44 = vrot.slane %v1266_v42, %v2862_v7  ;;  %v1270_v45 = vcombine.high %v1266_v42, %v1266_v42  ;;  %v299_v0 = vld [vmem:[%s3237_s1] sm:$0xf]  ;;  %v2537_v37 = vld [vmem:[%s3237_s1 + $0x14] sm:$0xf] }
  0x18   : > { %321 = vrot.lane.b32.xlu0 %v2882_v13, %s2793_s30  ;;  %536 = vrot.lane.b32.xlu1 %v527_v14, %s2794_s8  ;;  %v909_v33 = vrot.slane %v895_v30, %v2862_v7  ;;  %v1035_v36 = vcombine.high %v1027_v34, %v1027_v34  ;;  %v1034_v38 = vrot.slane %v1020_v35, %v2862_v7  ;;  %v427_v60 = vsel %vm332_vm1, %v2872_v9, 0 }
  0x19   : > { %v1160_v41 = vcombine.high %v1152_v39, %v1152_v39  ;;  %v1159_v43 = vrot.slane %v1145_v40, %v2862_v7  ;;  %v1285_v46 = vcombine.high %v1277_v44, %v1277_v44  ;;  %v1284_v47 = vrot.slane %v1270_v45, %v2862_v7 }
  0x1c   : > { %538 = vrot.lane.b32.xlu0 %v535_v16, %s2794_s8  ;;  %540 = vrot.lane.b32.xlu1 %v534_v18, %s2794_s8 }
  0x20   : > { %661 = vrot.lane.b32.xlu0 %v652_v19, %s2795_s9  ;;  %663 = vrot.lane.b32.xlu1 %v660_v21, %s2795_s9  ;;  %v2529_v21 = vld [vmem:[%s3237_s1 + $0xc] sm:$0xf] }
  0x24   : > { %665 = vrot.lane.b32.xlu0 %v659_v23, %s2795_s9  ;;  %786 = vrot.lane.b32.xlu1 %v777_v24, %s2796_s10 }
  0x28   : > { %788 = vrot.lane.b32.xlu0 %v785_v26, %s2796_s10  ;;  %790 = vrot.lane.b32.xlu1 %v784_v28, %s2796_s10 }
  0x2c   : > { %911 = vrot.lane.b32.xlu0 %v902_v29, %s2797_s11  ;;  %913 = vrot.lane.b32.xlu1 %v910_v31, %s2797_s11  ;;  %v2533_v29 = vld [vmem:[%s3237_s1 + $0x10] sm:$0xf] }
  0x30   : > { %915 = vrot.lane.b32.xlu0 %v909_v33, %s2797_s11  ;;  %1036 = vrot.lane.b32.xlu1 %v1027_v34, %s2798_s12 }
  0x34   : > { %1038 = vrot.lane.b32.xlu0 %v1035_v36, %s2798_s12  ;;  %1040 = vrot.lane.b32.xlu1 %v1034_v38, %s2798_s12 }
  0x38   : > { %1161 = vrot.lane.b32.xlu0 %v1152_v39, %s2799_s13  ;;  %1163 = vrot.lane.b32.xlu1 %v1160_v41, %s2799_s13 }
  0x3c   : > { %1165 = vrot.lane.b32.xlu0 %v1159_v43, %s2799_s13  ;;  %1286 = vrot.lane.b32.xlu1 %v1277_v44, %s2800_s14  ;;  %v2541_v44 = vld [vmem:[%s3237_s1 + $0x18] sm:$0xf] }
  0x40   : > { %1288 = vrot.lane.b32.xlu0 %v1285_v46, %s2800_s14  ;;  %1290 = vrot.lane.b32.xlu1 %v1284_v47, %s2800_s14 }
  0x44   : > { %1394 = vperm.xlu0 %2768, %v1391_v48   ;;  %1406 = vperm.xlu1 %2769, %v1403_v49  }
  0x86   : > { %v320_v50 = vpop.permute.xlu0 %319  ;;  %v324_v51 = vpop.permute.xlu1 %323 }
  0x87   : > { %v340_v52 = vsel %vm332_vm1, %v324_v51, 0 }
  0x88   : > { %2638 = vmatpush3.bf16.msra.mxu1 %v340_v52 }
  0x89   : > { %2643 = vmatprep.subr.bf16.mxu1 %v2790_v3 }
  0x8a   : > { %v322_v53 = vpop.permute.xlu0 %321  ;;  %v537_v59 = vpop.permute.xlu1 %536 }
  0x8b   : > { %v327_v55 = vsel %vm325_vm2, %v322_v53, %v324_v51  ;;  %v326_v56 = vsel %vm325_vm2, %v320_v50, %v322_v53  ;;  %2640 = vmatmul.mubr.msk.bf16.vlgmr.msra.gmra.mxu1 %vm328_vm3, %v2518_v54  ;;  %v2545_v51 = vld [vmem:[%s3237_s1 + $0x1c] sm:$0xf] }
  0x8c   : > { %2519 = vmatprep.subr.msk.bf16.mxu0 %vm332_vm1, %v327_v55  ;;  %v334_v58 = vsel %vm332_vm1, %v326_v56, 0  ;;  %2644 = vmatpush3.bf16.msra.mxu1 %v433_v57  ;;  %v2549_v55 = vld [vmem:[%s3237_s1 + $0x20] sm:$0xf] }
  0x8d   : > { %357 = vmatpush1.bf16.msra.mxu0 %v334_v58  ;;  %2645 = vmatprep.mubr.msk.bf16.mxu1 %vm2791_vm0, %v2790_v3 }
  0x8e   : > { %2522 = vmatprep.subr.msk.bf16.mxu0 %vm332_vm1, %v2882_v13  ;;  %v539_v61 = vpop.permute.xlu0 %538  ;;  %2649 = vmatprep.subr.bf16.mxu1 %v2790_v3  ;;  %v541_v62 = vpop.permute.xlu1 %540 }
  0x8f   : > { %v544_v63 = vsel %vm542_vm4, %v539_v61, %v541_v62  ;;  %v543_v2 = vsel %vm542_vm4, %v537_v59, %v539_v61  ;;  %v555_v5 = vsel %vm332_vm1, %v541_v62, 0 }
  0x90   : > { %2520 = vmatmul.mubr.msk.bf16.vlgmr.msra.gmra.mxu0 %vm328_vm3, %v2518_v54  ;;  %v549_v8 = vsel %vm332_vm1, %v543_v2, 0 }
  0x91   : > { %450 = vmatpush1.bf16.msra.mxu0 %v427_v60  ;;  %467 = vmatprep.mubr.bf16.mxu0 %v2792_v6 }
  0x92   : > { %2526 = vmatprep.subr.msk.bf16.mxu0 %vm332_vm1, %v544_v63  ;;  %v662_v1 = vpop.permute.xlu0 %661  ;;  %v664_v7 = vpop.permute.xlu1 %663 }
  0x93   : > { %2646 = vmatmul.mubr.msk.bf16.vlgmr.msra.gmra.mxu1 %vm328_vm3, %v299_v0  ;;  %v668_v15 = vsel %vm667_vm5, %v662_v1, %v664_v7 }
  0x94   : > { %2650 = vmatpush3.bf16.msra.mxu1 %v555_v5  ;;  %2651 = vmatprep.mubr.msk.bf16.mxu1 %vm2791_vm0, %v2790_v3  ;;  %v674_v17 = vsel %vm332_vm1, %v668_v15, 0 }
  0x95   : > { %2655 = vmatprep.subr.bf16.mxu1 %v2790_v3 }
  0x96   : > { %v666_v9 = vpop.permute.xlu0 %665  ;;  %v787_v11 = vpop.permute.xlu1 %786 }
  0x97   : > { %v669_v10 = vsel %vm667_vm5, %v664_v7, %v666_v9  ;;  %v680_v14 = vsel %vm332_vm1, %v666_v9, 0 }
  0x98   : > { %2523 = vmatmul.mubr.msk.bf16.vlgmr.msra.gmra.mxu0 %vm328_vm3, %v299_v0 }
  0x99   : > { %572 = vmatpush1.bf16.msra.mxu0 %v549_v8  ;;  %589 = vmatprep.mubr.bf16.mxu0 %v2792_v6 }
  0x9a   : > { %2530 = vmatprep.subr.msk.bf16.mxu0 %vm332_vm1, %v669_v10  ;;  %v789_v13 = vpop.permute.xlu0 %788  ;;  %v791_v16 = vpop.permute.xlu1 %790 }
  0x9b   : > { %2652 = vmatmul.mubr.msk.bf16.vlgmr.msra.gmra.mxu1 %vm328_vm3, %v2525_v12  ;;  %v794_v19 = vsel %vm792_vm6, %v789_v13, %v791_v16  ;;  %v793_v22 = vsel %vm792_vm6, %v787_v11, %v789_v13  ;;  %v805_v23 = vsel %vm332_vm1, %v791_v16, 0 }
  0x9c   : > { %2656 = vmatpush3.bf16.msra.mxu1 %v680_v14  ;;  %2657 = vmatprep.mubr.msk.bf16.mxu1 %vm2791_vm0, %v2790_v3  ;;  %v799_v25 = vsel %vm332_vm1, %v793_v22, 0 }
  0x9d   : > { %2661 = vmatprep.subr.bf16.mxu1 %v2790_v3 }
  0x9e   : > { %v912_v18 = vpop.permute.xlu0 %911  ;;  %v914_v20 = vpop.permute.xlu1 %913 }
  0x9f   : > { %v918_v31 = vsel %vm917_vm7, %v912_v18, %v914_v20 }
  0xa0   : > { %2527 = vmatmul.mubr.msk.bf16.vlgmr.msra.gmra.mxu0 %vm328_vm3, %v2525_v12  ;;  %v924_v33 = vsel %vm332_vm1, %v918_v31, 0 }
  0xa1   : > { %697 = vmatpush1.bf16.msra.mxu0 %v674_v17  ;;  %714 = vmatprep.mubr.bf16.mxu0 %v2792_v6 }
  0xa2   : > { %2534 = vmatprep.subr.msk.bf16.mxu0 %vm332_vm1, %v794_v19  ;;  %v916_v24 = vpop.permute.xlu0 %915  ;;  %v1037_v26 = vpop.permute.xlu1 %1036 }
  0xa3   : > { %2658 = vmatmul.mubr.msk.bf16.vlgmr.msra.gmra.mxu1 %vm328_vm3, %v2529_v21  ;;  %v919_v27 = vsel %vm917_vm7, %v914_v20, %v916_v24  ;;  %v930_v30 = vsel %vm332_vm1, %v916_v24, 0 }
  0xa4   : > { %2662 = vmatpush3.bf16.msra.mxu1 %v805_v23  ;;  %2663 = vmatprep.mubr.msk.bf16.mxu1 %vm2791_vm0, %v2790_v3 }
  0xa5   : > { %2667 = vmatprep.subr.bf16.mxu1 %v2790_v3 }
  0xa6   : > { %v1039_v28 = vpop.permute.xlu0 %1038  ;;  %v1041_v32 = vpop.permute.xlu1 %1040 }
  0xa7   : > { %v1044_v35 = vsel %vm1042_vm8, %v1039_v28, %v1041_v32  ;;  %v1043_v38 = vsel %vm1042_vm8, %v1037_v26, %v1039_v28  ;;  %v1055_v39 = vsel %vm332_vm1, %v1041_v32, 0 }
  0xa8   : > { %2531 = vmatmul.mubr.msk.bf16.vlgmr.msra.gmra.mxu0 %vm328_vm3, %v2529_v21  ;;  %v1049_v41 = vsel %vm332_vm1, %v1043_v38, 0 }
  0xa9   : > { %822 = vmatpush1.bf16.msra.mxu0 %v799_v25  ;;  %839 = vmatprep.mubr.bf16.mxu0 %v2792_v6 }
  0xaa   : > { %2538 = vmatprep.subr.msk.bf16.mxu0 %vm332_vm1, %v919_v27  ;;  %v1162_v34 = vpop.permute.xlu0 %1161  ;;  %v1164_v36 = vpop.permute.xlu1 %1163 }
  0xab   : > { %2664 = vmatmul.mubr.msk.bf16.vlgmr.msra.gmra.mxu1 %vm328_vm3, %v2533_v29  ;;  %v1168_v46 = vsel %vm1167_vm9, %v1162_v34, %v1164_v36 }
  0xac   : > { %2668 = vmatpush3.bf16.msra.mxu1 %v930_v30  ;;  %2669 = vmatprep.mubr.msk.bf16.mxu1 %vm2791_vm0, %v2790_v3  ;;  %v1174_v49 = vsel %vm332_vm1, %v1168_v46, 0 }
  0xad   : > { %2673 = vmatprep.subr.bf16.mxu1 %v2790_v3 }
  0xae   : > { %v1166_v40 = vpop.permute.xlu0 %1165  ;;  %v1287_v42 = vpop.permute.xlu1 %1286 }
  0xaf   : > { %v1169_v43 = vsel %vm1167_vm9, %v1164_v36, %v1166_v40  ;;  %v1180_v45 = vsel %vm332_vm1, %v1166_v40, 0 }
  0xb0   : > { %2535 = vmatmul.mubr.msk.bf16.vlgmr.msra.gmra.mxu0 %vm328_vm3, %v2533_v29 }
  0xb1   : > { %947 = vmatpush1.bf16.msra.mxu0 %v924_v33  ;;  %964 = vmatprep.mubr.bf16.mxu0 %v2792_v6 }
  0xb2   : > { %2542 = vmatprep.subr.msk.bf16.mxu0 %vm332_vm1, %v1044_v35  ;;  %v1289_v47 = vpop.permute.xlu0 %1288  ;;  %v1291_v48 = vpop.permute.xlu1 %1290 }
  0xb3   : > { %2670 = vmatmul.mubr.msk.bf16.vlgmr.msra.gmra.mxu1 %vm328_vm3, %v2537_v37  ;;  %v1294_v50 = vsel %vm1292_vm10, %v1289_v47, %v1291_v48  ;;  %v1293_v52 = vsel %vm1292_vm10, %v1287_v42, %v1289_v47  ;;  %v1305_v53 = vsel %vm332_vm1, %v1291_v48, 0 }
  0xb4   : > { %2674 = vmatpush3.bf16.msra.mxu1 %v1055_v39  ;;  %2675 = vmatprep.mubr.msk.bf16.mxu1 %vm2791_vm0, %v2790_v3  ;;  %v1299_v54 = vsel %vm332_vm1, %v1293_v52, 0 }
  0xb5   : > { %2679 = vmatprep.subr.bf16.mxu1 %v2790_v3 }
  0xb8   : > { %2539 = vmatmul.mubr.msk.bf16.vlgmr.msra.gmra.mxu0 %vm328_vm3, %v2537_v37 }
  0xb9   : > { %1072 = vmatpush1.bf16.msra.mxu0 %v1049_v41  ;;  %1089 = vmatprep.mubr.bf16.mxu0 %v2792_v6 }
  0xba   : > { %2546 = vmatprep.subr.msk.bf16.mxu0 %vm332_vm1, %v1169_v43 }
  0xbb   : > { %2676 = vmatmul.mubr.msk.bf16.vlgmr.msra.gmra.mxu1 %vm328_vm3, %v2541_v44 }
  0xbc   : > { %2680 = vmatpush3.bf16.msra.mxu1 %v1180_v45  ;;  %2681 = vmatprep.mubr.msk.bf16.mxu1 %vm2791_vm0, %v2790_v3 }
  0xbd   : > { %2685 = vmatprep.subr.bf16.mxu1 %v2790_v3 }
  0xc0   : > { %2543 = vmatmul.mubr.msk.bf16.vlgmr.msra.gmra.mxu0 %vm328_vm3, %v2541_v44 }
  0xc1   : > { %1197 = vmatpush1.bf16.msra.mxu0 %v1174_v49  ;;  %1214 = vmatprep.mubr.bf16.mxu0 %v2792_v6 }
  0xc2   : > { %2550 = vmatprep.subr.msk.bf16.mxu0 %vm332_vm1, %v1294_v50  ;;  %vm1459_vm1 = vcmask 707584  }
  0xc3   : > { %2682 = vmatmul.mubr.msk.bf16.vlgmr.msra.gmra.mxu1 %vm328_vm3, %v2545_v51 }
  0xc4   : > { %2686 = vmatpush3.bf16.msra.mxu1 %v1305_v53  ;;  %2687 = vmatprep.mubr.msk.bf16.mxu1 %vm2791_vm0, %v2790_v3 }
  0xc5   : > { %2691 = vmatprep.subr.bf16.mxu1 %v2790_v3 }
  0xc8   : > { %2547 = vmatmul.mubr.msk.bf16.vlgmr.msra.gmra.mxu0 %vm328_vm3, %v2545_v51 }
  0xc9   : > { %1322 = vmatpush1.bf16.msra.mxu0 %v1299_v54  ;;  %1339 = vmatprep.mubr.bf16.mxu0 %v2792_v6 }
  0xcb   : > { %2688 = vmatmul.mubr.msk.bf16.vlgmr.msra.gmra.mxu1 %vm328_vm3, %v2549_v55 }
  0xcc   : > { %2693 = vmatprep.mubr.msk.bf16.mxu1 %vm2791_vm0, %v2790_v3 }
  0xd0   : > { %2551 = vmatmul.mubr.msk.bf16.vlgmr.msra.gmra.mxu0 %vm328_vm3, %v2549_v55  ;;  %vm1486_vm3 = vcmask 1043456  }
  0xd1   : > { %1528 = vmatprep.mubr.bf16.mxu0 %v2792_v6 }
 0x14b   : > { %v417_v56 = vpop.f32.mrf.mxu1 }
 0x14d   : > { %v2641_v57 = vpop.f32.mrf.mxu1 }
 0x14f   : > { %v420_v59 = vpop.f32.mrf.mxu1 }
 0x150   : > { %v376_v58 = vpop.f32.mrf.mxu0 }
 0x151   : > { %v2642_v61 = vpop.f32.mrf.mxu1 }
 0x152   : > { %v378_v60 = vpop.f32.mrf.mxu0 }
 0x153   : > { %v510_v63 = vpop.f32.mrf.mxu1 }
 0x154   : > { %v380_v62 = vpop.f32.mrf.mxu0  ;;  %v511_v45 = vadd.f32 %v510_v63, %v417_v56 }
 0x155   : > { %v2647_v1 = vpop.f32.mrf.mxu1 }
 0x156   : > { %v381_v0 = vpop.f32.mrf.mxu0 }
 0x157   : > { %v513_v5 = vpop.f32.mrf.mxu1 }
 0x158   : > { %v469_v2 = vpop.f32.mrf.mxu0 }
 0x159   : > { %v2648_v8 = vpop.f32.mrf.mxu1  ;;  %v470_v50 = vadd.f32 %v469_v2, %v376_v58 }
 0x15a   : > { %v471_v7 = vpop.f32.mrf.mxu0 }
 0x15b   : > { %v632_v10 = vpop.f32.mrf.mxu1  ;;  %v472_v54 = vadd.f32 %v471_v7, %v378_v60 }
 0x15c   : > { %v473_v9 = vpop.f32.mrf.mxu0  ;;  %v640_v48 = vadd.f32 %v632_v10, %v511_v45 }
 0x15d   : > { %v2653_v12 = vpop.f32.mrf.mxu1 }
 0x15e   : > { %v474_v11 = vpop.f32.mrf.mxu0 }
 0x15f   : > { %v635_v14 = vpop.f32.mrf.mxu1 }
 0x160   : > { %v591_v13 = vpop.f32.mrf.mxu0 }
 0x161   : > { %v2654_v16 = vpop.f32.mrf.mxu1  ;;  %v638_v55 = vadd.f32 %v591_v13, %v470_v50 }
 0x162   : > { %v593_v15 = vpop.f32.mrf.mxu0 }
 0x163   : > { %v757_v18 = vpop.f32.mrf.mxu1  ;;  %v639_v62 = vadd.f32 %v593_v15, %v472_v54 }
 0x164   : > { %v595_v17 = vpop.f32.mrf.mxu0  ;;  %v765_v52 = vadd.f32 %v757_v18, %v640_v48 }
 0x165   : > { %v2659_v20 = vpop.f32.mrf.mxu1  ;;  %v1395_v17 = vpop.permute.xlu0 %1394 }
 0x166   : > { %v596_v19 = vpop.f32.mrf.mxu0 }
 0x167   : > { %v760_v22 = vpop.f32.mrf.mxu1  ;;  %v1423_v19 = vsub.s32 2, %v2853_v4 }
 0x168   : > { %v716_v21 = vpop.f32.mrf.mxu0  ;;  %v297_v22 = vld [vmem:[%s3242_s6] sm:$0x7] }
 0x169   : > { %v2660_v24 = vpop.f32.mrf.mxu1  ;;  %v763_v0 = vadd.f32 %v716_v21, %v638_v55 }
 0x16a   : > { %v718_v23 = vpop.f32.mrf.mxu0 }
 0x16b   : > { %v882_v26 = vpop.f32.mrf.mxu1  ;;  %v764_v9 = vadd.f32 %v718_v23, %v639_v62 }
 0x16c   : > { %v720_v25 = vpop.f32.mrf.mxu0  ;;  %v890_v59 = vadd.f32 %v882_v26, %v765_v52 }
 0x16d   : > { %v2665_v28 = vpop.f32.mrf.mxu1 }
 0x16e   : > { %v721_v27 = vpop.f32.mrf.mxu0  ;;  %v1407_v28 = vpop.permute.xlu1 %1406 }
 0x16f   : > { %v885_v30 = vpop.f32.mrf.mxu1 }
 0x170   : > { %v841_v29 = vpop.f32.mrf.mxu0 }
 0x171   : > { %v2666_v32 = vpop.f32.mrf.mxu1  ;;  %v888_v56 = vadd.f32 %v841_v29, %v763_v0 }
 0x172   : > { %v843_v31 = vpop.f32.mrf.mxu0  ;;  %v3068_v32 = vrot.slane %v297_v22, %v1423_v19 }
 0x173   : > { %v1007_v34 = vpop.f32.mrf.mxu1  ;;  %v889_v12 = vadd.f32 %v843_v31, %v764_v9 }
 0x174   : > { %v845_v33 = vpop.f32.mrf.mxu0  ;;  %v1015_v5 = vadd.f32 %v1007_v34, %v890_v59 }
 0x175   : > { %v2671_v36 = vpop.f32.mrf.mxu1 }
 0x176   : > { %v846_v35 = vpop.f32.mrf.mxu0  ;;  %v1419_v36 = vsub.s32 1, %v2853_v4 }
 0x177   : > { %v1010_v38 = vpop.f32.mrf.mxu1  ;;  %v1415_v35 = vsub.s32 0, %v2853_v4 }
 0x178   : > { %v966_v37 = vpop.f32.mrf.mxu0 }
 0x179   : > { %v2672_v40 = vpop.f32.mrf.mxu1  ;;  %v1013_v58 = vadd.f32 %v966_v37, %v888_v56  ;;  %v3073_v45 = vrot.slane %v297_v22, %v1415_v35  ;;  %v2569_v35 = vld [vmem:[%s3240_s4 + $0xc] sm:$0xf] }
 0x17a   : > { %v968_v39 = vpop.f32.mrf.mxu0 }
 0x17b   : > { %v1132_v42 = vpop.f32.mrf.mxu1  ;;  %v1014_v60 = vadd.f32 %v968_v39, %v889_v12 }
 0x17c   : > { %v970_v41 = vpop.f32.mrf.mxu0  ;;  %v1140_v11 = vadd.f32 %v1132_v42, %v1015_v5 }
 0x17d   : > { %v2677_v44 = vpop.f32.mrf.mxu1 }
 0x17e   : > { %v971_v43 = vpop.f32.mrf.mxu0 }
 0x17f   : > { %v1135_v47 = vpop.f32.mrf.mxu1 }
 0x180   : > { %v1091_v46 = vpop.f32.mrf.mxu0 }
 0x181   : > { %v2678_v51 = vpop.f32.mrf.mxu1  ;;  %v1138_v7 = vadd.f32 %v1091_v46, %v1013_v58  ;;  %v3075_v46 = vrot.slane %v297_v22, %v1419_v36  ;;  %v2555_v58 = vld [vmem:[%s3240_s4 + $0x4] sm:$0xf] }
 0x182   : > { %v1093_v49 = vpop.f32.mrf.mxu0 }
 0x183   : > { %v1257_v57 = vpop.f32.mrf.mxu1  ;;  %v1139_v20 = vadd.f32 %v1093_v49, %v1014_v60 }
 0x184   : > { %v1095_v53 = vpop.f32.mrf.mxu0  ;;  %v1265_v14 = vadd.f32 %v1257_v57, %v1140_v11 }
 0x185   : > { %v2683_v1 = vpop.f32.mrf.mxu1 }
 0x186   : > { %v1096_v61 = vpop.f32.mrf.mxu0  ;;  %v2412_v1 = vld [vmem:[%s3241_s5] sm:$0xff] }
 0x187   : > { %v1260_v63 = vpop.f32.mrf.mxu1 }
 0x188   : > { %v1216_v8 = vpop.f32.mrf.mxu0 }
 0x189   : > { %v2684_v2 = vpop.f32.mrf.mxu1  ;;  %v1263_v21 = vadd.f32 %v1216_v8, %v1138_v7 }
 0x18a   : > { %v1218_v10 = vpop.f32.mrf.mxu0 }
 0x18b   : > { %v1382_v13 = vpop.f32.mrf.mxu1  ;;  %v1264_v26 = vadd.f32 %v1218_v10, %v1139_v20 }
 0x18c   : > { %v1220_v16 = vpop.f32.mrf.mxu0  ;;  %v1390_v15 = vadd.f32 %v1382_v13, %v1265_v14 }
 0x18d   : > { %v2689_v23 = vpop.f32.mrf.mxu1 }
 0x18e   : > { %v1221_v18 = vpop.f32.mrf.mxu0  ;;  %v1399_v24 = vadd.f32 %v1395_v17, %v1390_v15  ;;  %v1463_v15 = vld [vmem:[%s3240_s4] sm:$0xf] }
 0x18f   : > { %v1385_v29 = vpop.f32.mrf.mxu1 }
 0x190   : > { %v1341_v25 = vpop.f32.mrf.mxu0  ;;  %v1402_v30 = vmax.f32 %v1399_v24, 0.0 }
 0x191   : > { %v1388_v27 = vadd.f32 %v1341_v25, %v1263_v21  ;;  %v2690_v37 = vpop.f32.mrf.mxu1 }
 0x192   : > { %v1343_v31 = vpop.f32.mrf.mxu0  ;;  %v1411_v38 = vadd.f32 %v1407_v28, %v1402_v30 }
 0x193   : > { %v1397_v33 = vadd.f32 %v1395_v17, %v1388_v27  ;;  %v1389_v34 = vadd.f32 %v1343_v31, %v1264_v26  ;;  %v2565_v26 = vld [vmem:[%s3240_s4 + $0x8] sm:$0xf] }
 0x194   : > { %v1345_v39 = vpop.f32.mrf.mxu0  ;;  %v1430_v43 = vmul.f32 %v3068_v32, %v1411_v38 }
 0x195   : > { %v1400_v40 = vmax.f32 %v1397_v33, 0.0  ;;  %v1398_v41 = vadd.f32 %v1395_v17, %v1389_v34 }
 0x196   : > { %v1346_v42 = vpop.f32.mrf.mxu0  ;;  %v2598_v48 = vpack.c.bf16 %v1430_v43, %v1430_v43  ;;  %v2573_v43 = vld [vmem:[%s3240_s4 + $0x10] sm:$0xf] }
 0x197   : > { %v1401_v44 = vmax.f32 %v1398_v41, 0.0  ;;  %v1409_v47 = vadd.f32 %v1407_v28, %v1400_v40 }
 0x198   : > { %1447 = vrot.lane.b32.xlu0 %v2598_v48, %s2801_s15 }
 0x199   : > { %v1410_v49 = vadd.f32 %v1407_v28, %v1401_v44  ;;  %v1428_v4 = vmul.f32 %v3073_v45, %v1409_v47 }
 0x19b   : > { %v1429_v50 = vmul.f32 %v3075_v46, %v1410_v49 }
 0x19d   : > { %v2597_v51 = vpack.c.bf16 %v1429_v50, %v1428_v4 }
 0x19f   : > { %1445 = vrot.lane.b32.xlu1 %v2597_v51, %s2801_s15  ;;  %v2577_v51 = vld [vmem:[%s3240_s4 + $0x14] sm:$0xf]  ;;  %s2746_s15 = smul.u32 12, %s3245_s25 }
 0x20a   : > { %v1448_v54 = vpop.permute.xlu0 %1447 }
 0x211   : > { %v1446_v52 = vpop.permute.xlu1 %1445 }
 0x212   : > { %v1449_v53 = vrot.slane %v1446_v52, 4 }
 0x214   : > { %v1451_v55 = vsel %vm1450_vm14, %v1449_v53, %v1446_v52  ;;  %v1452_v57 = vsel %vm1450_vm14, %v1449_v53, %v1448_v54 }
 0x215   : > { %1458 = vst.msk [vmem:[#allocation2] sm:$0xff] %vm1457_vm15, %v1451_v55 }
 0x216   : > { %1460 = vst.msk [vmem:[#allocation2 + $0x8] sm:$0xf] %vm1459_vm1, %v1452_v57 }
 0x21c   : > { %v1461_v59 = vld [vmem:[#allocation2] sm:$0xff] }
 0x21d   : > { %v2556_v61 = vcombine.low %v1461_v59, %v1461_v59  ;;  %v2557_v62 = vcombine.high %v1461_v59, %v1461_v59  ;;  %v2780_v0 = vld [vmem:[#allocation2 + $0x8] ss:$0 sps:$4 sm:$0xff]  }
 0x21e   : > { %v1587_v16 = vsel %vm1486_vm3, %v2780_v0, 0 }
 0x21f   : > { %1474 = vrot.lane.b32.xlu1 %v2556_v61, %s2793_s30  ;;  %1476 = vrot.lane.b32.xlu0 %v2557_v62, %s2793_s30  ;;  %v1581_v60 = vsel %vm1486_vm3, %v2556_v61, 0 }
 0x223   : > { %1672 = vrot.lane.b32.xlu0 %v2556_v61, %s2794_s8  ;;  %1478 = vrot.lane.b32.xlu1 %v2780_v0, %s2793_s30 }
 0x227   : > { %1676 = vrot.lane.b32.xlu0 %v2780_v0, %s2794_s8  ;;  %1674 = vrot.lane.b32.xlu1 %v2557_v62, %s2794_s8 }
 0x22b   : > { %1780 = vrot.lane.b32.xlu0 %v2557_v62, %s2795_s9  ;;  %1778 = vrot.lane.b32.xlu1 %v2556_v61, %s2795_s9 }
 0x22f   : > { %1884 = vrot.lane.b32.xlu0 %v2556_v61, %s2796_s10  ;;  %1782 = vrot.lane.b32.xlu1 %v2780_v0, %s2795_s9  ;;  %s295_s9 = scalar_lea.vmem %s3243_s7, %s2746_s15 }
 0x233   : > { %1888 = vrot.lane.b32.xlu0 %v2780_v0, %s2796_s10  ;;  %1886 = vrot.lane.b32.xlu1 %v2557_v62, %s2796_s10 }
 0x237   : > { %1992 = vrot.lane.b32.xlu0 %v2557_v62, %s2797_s11  ;;  %1990 = vrot.lane.b32.xlu1 %v2556_v61, %s2797_s11 }
 0x23b   : > { %2096 = vrot.lane.b32.xlu0 %v2556_v61, %s2798_s12  ;;  %1994 = vrot.lane.b32.xlu1 %v2780_v0, %s2797_s11 }
 0x23f   : > { %2100 = vrot.lane.b32.xlu0 %v2780_v0, %s2798_s12  ;;  %2098 = vrot.lane.b32.xlu1 %v2557_v62, %s2798_s12 }
 0x243   : > { %2204 = vrot.lane.b32.xlu0 %v2557_v62, %s2799_s13  ;;  %2202 = vrot.lane.b32.xlu1 %v2556_v61, %s2799_s13 }
 0x247   : > { %2308 = vrot.lane.b32.xlu0 %v2556_v61, %s2800_s14  ;;  %2206 = vrot.lane.b32.xlu1 %v2780_v0, %s2799_s13  ;;  %v2581_v61 = vld [vmem:[%s3240_s4 + $0x18] sm:$0xf] }
 0x24b   : > { %2312 = vrot.lane.b32.xlu0 %v2780_v0, %s2800_s14  ;;  %2310 = vrot.lane.b32.xlu1 %v2557_v62, %s2800_s14 }
 0x24f   : > { %2415 = vperm.xlu1 %2769, %v2412_v1  }
 0x291   : > { %v1475_v5 = vpop.permute.xlu1 %1474  ;;  %v1477_v8 = vpop.permute.xlu0 %1476 }
 0x292   : > { %v1480_v9 = vsel %vm325_vm2, %v1475_v5, %v1477_v8 }
 0x293   : > { %v1488_v12 = vsel %vm1486_vm3, %v1480_v9, 0 }
 0x295   : > { %v1479_v56 = vpop.permute.xlu1 %1478  ;;  %v1673_v63 = vpop.permute.xlu0 %1672 }
 0x296   : > { %v1481_v11 = vsel %vm325_vm2, %v1477_v8, %v1479_v56  ;;  %v1494_v10 = vsel %vm1486_vm3, %v1479_v56, 0  ;;  %v2585_v56 = vld [vmem:[%s3240_s4 + $0x1c] sm:$0xf] }
 0x297   : > { %2559 = vmatprep.subr.msk.bf16.mxu0 %vm1486_vm3, %v1481_v11  ;;  %2692 = vmatpush3.bf16.msra.mxu1 %v1494_v10 }
 0x298   : > { %1511 = vmatpush1.bf16.msra.mxu0 %v1488_v12  ;;  %2697 = vmatprep.subr.bf16.mxu1 %v2790_v3  ;;  %v2589_v12 = vld [vmem:[%s3240_s4 + $0x20] sm:$0xf] }
 0x299   : > { %v1675_v2 = vpop.permute.xlu1 %1674  ;;  %2562 = vmatprep.subr.msk.bf16.mxu0 %vm1486_vm3, %v2557_v62  ;;  %v1677_v14 = vpop.permute.xlu0 %1676 }
 0x29a   : > { %2694 = vmatmul.mubr.msk.bf16.vlgmr.msra.gmra.mxu1 %vm1482_vm11, %v2555_v58  ;;  %v1679_v7 = vsel %vm542_vm4, %v1675_v2, %v1677_v14  ;;  %v1678_v18 = vsel %vm542_vm4, %v1673_v63, %v1675_v2  ;;  %v1690_v21 = vsel %vm1486_vm3, %v1677_v14, 0 }
 0x29b   : > { %2560 = vmatmul.mubr.msk.bf16.vlgmr.msra.gmra.mxu0 %vm1482_vm11, %v2555_v58  ;;  %2698 = vmatpush3.bf16.msra.mxu1 %v1587_v16  ;;  %v1684_v23 = vsel %vm1486_vm3, %v1678_v18, 0 }
 0x29c   : > { %1604 = vmatpush1.bf16.msra.mxu0 %v1581_v60  ;;  %2699 = vmatprep.mubr.msk.bf16.mxu1 %vm2791_vm0, %v2790_v3 }
 0x29d   : > { %v1779_v13 = vpop.permute.xlu1 %1778  ;;  %2566 = vmatprep.subr.msk.bf16.mxu0 %vm1486_vm3, %v1679_v7  ;;  %v1781_v17 = vpop.permute.xlu0 %1780  ;;  %2703 = vmatprep.subr.bf16.mxu1 %v2790_v3 }
 0x29e   : > { %1621 = vmatprep.mubr.bf16.mxu0 %v2792_v6  ;;  %v1784_v27 = vsel %vm667_vm5, %v1779_v13, %v1781_v17 }
 0x29f   : > { %v1790_v30 = vsel %vm1486_vm3, %v1784_v27, 0 }
 0x2a1   : > { %v1783_v19 = vpop.permute.xlu1 %1782  ;;  %v1885_v20 = vpop.permute.xlu0 %1884 }
 0x2a2   : > { %v1785_v22 = vsel %vm667_vm5, %v1781_v17, %v1783_v19  ;;  %2700 = vmatmul.mubr.msk.bf16.vlgmr.msra.gmra.mxu1 %vm1482_vm11, %v1463_v15  ;;  %v1796_v29 = vsel %vm1486_vm3, %v1783_v19, 0 }
 0x2a3   : > { %2704 = vmatpush3.bf16.msra.mxu1 %v1690_v21  ;;  %2563 = vmatmul.mubr.msk.bf16.vlgmr.msra.gmra.mxu0 %vm1482_vm11, %v1463_v15 }
 0x2a4   : > { %1707 = vmatpush1.bf16.msra.mxu0 %v1684_v23  ;;  %2705 = vmatprep.mubr.msk.bf16.mxu1 %vm2791_vm0, %v2790_v3 }
 0x2a5   : > { %2570 = vmatprep.subr.msk.bf16.mxu0 %vm1486_vm3, %v1785_v22  ;;  %v1887_v24 = vpop.permute.xlu1 %1886  ;;  %v1889_v25 = vpop.permute.xlu0 %1888  ;;  %2709 = vmatprep.subr.bf16.mxu1 %v2790_v3 }
 0x2a6   : > { %1724 = vmatprep.mubr.bf16.mxu0 %v2792_v6  ;;  %v1891_v33 = vsel %vm792_vm6, %v1887_v24, %v1889_v25  ;;  %v1890_v36 = vsel %vm792_vm6, %v1885_v20, %v1887_v24  ;;  %v1902_v38 = vsel %vm1486_vm3, %v1889_v25, 0 }
 0x2a7   : > { %v1896_v39 = vsel %vm1486_vm3, %v1890_v36, 0 }
 0x2a9   : > { %v1991_v28 = vpop.permute.xlu1 %1990  ;;  %v1993_v31 = vpop.permute.xlu0 %1992 }
 0x2aa   : > { %2706 = vmatmul.mubr.msk.bf16.vlgmr.msra.gmra.mxu1 %vm1482_vm11, %v2565_v26  ;;  %v1996_v44 = vsel %vm917_vm7, %v1991_v28, %v1993_v31 }
 0x2ab   : > { %2710 = vmatpush3.bf16.msra.mxu1 %v1796_v29  ;;  %2567 = vmatmul.mubr.msk.bf16.vlgmr.msra.gmra.mxu0 %vm1482_vm11, %v2565_v26  ;;  %v2002_v48 = vsel %vm1486_vm3, %v1996_v44, 0 }
 0x2ac   : > { %1813 = vmatpush1.bf16.msra.mxu0 %v1790_v30  ;;  %2711 = vmatprep.mubr.msk.bf16.mxu1 %vm2791_vm0, %v2790_v3 }
 0x2ad   : > { %2574 = vmatprep.subr.msk.bf16.mxu0 %vm1486_vm3, %v1891_v33  ;;  %2715 = vmatprep.subr.bf16.mxu1 %v2790_v3  ;;  %v1995_v34 = vpop.permute.xlu1 %1994  ;;  %v2097_v37 = vpop.permute.xlu0 %2096 }
 0x2ae   : > { %1830 = vmatprep.mubr.bf16.mxu0 %v2792_v6  ;;  %v1997_v40 = vsel %vm917_vm7, %v1993_v31, %v1995_v34  ;;  %v2008_v47 = vsel %vm1486_vm3, %v1995_v34, 0 }
 0x2b1   : > { %v2099_v41 = vpop.permute.xlu1 %2098  ;;  %v2101_v42 = vpop.permute.xlu0 %2100 }
 0x2b2   : > { %2712 = vmatmul.mubr.msk.bf16.vlgmr.msra.gmra.mxu1 %vm1482_vm11, %v2569_v35  ;;  %v2103_v4 = vsel %vm1042_vm8, %v2099_v41, %v2101_v42  ;;  %v2102_v52 = vsel %vm1042_vm8, %v2097_v37, %v2099_v41  ;;  %v2114_v54 = vsel %vm1486_vm3, %v2101_v42, 0 }
 0x2b3   : > { %2716 = vmatpush3.bf16.msra.mxu1 %v1902_v38  ;;  %2571 = vmatmul.mubr.msk.bf16.vlgmr.msra.gmra.mxu0 %vm1482_vm11, %v2569_v35  ;;  %v2108_v55 = vsel %vm1486_vm3, %v2102_v52, 0 }
 0x2b4   : > { %1919 = vmatpush1.bf16.msra.mxu0 %v1896_v39  ;;  %2717 = vmatprep.mubr.msk.bf16.mxu1 %vm2791_vm0, %v2790_v3 }
 0x2b5   : > { %2578 = vmatprep.subr.msk.bf16.mxu0 %vm1486_vm3, %v1997_v40  ;;  %2721 = vmatprep.subr.bf16.mxu1 %v2790_v3  ;;  %v2203_v49 = vpop.permute.xlu1 %2202  ;;  %v2205_v50 = vpop.permute.xlu0 %2204 }
 0x2b6   : > { %1936 = vmatprep.mubr.bf16.mxu0 %v2792_v6  ;;  %v2208_v62 = vsel %vm1167_vm9, %v2203_v49, %v2205_v50 }
 0x2b7   : > { %v2214_v8 = vsel %vm1486_vm3, %v2208_v62, 0 }
 0x2b9   : > { %v2207_v53 = vpop.permute.xlu1 %2206  ;;  %v2309_v57 = vpop.permute.xlu0 %2308 }
 0x2ba   : > { %2718 = vmatmul.mubr.msk.bf16.vlgmr.msra.gmra.mxu1 %vm1482_vm11, %v2573_v43  ;;  %v2209_v59 = vsel %vm1167_vm9, %v2205_v50, %v2207_v53  ;;  %v2220_v5 = vsel %vm1486_vm3, %v2207_v53, 0 }
 0x2bb   : > { %2722 = vmatpush3.bf16.msra.mxu1 %v2008_v47  ;;  %2575 = vmatmul.mubr.msk.bf16.vlgmr.msra.gmra.mxu0 %vm1482_vm11, %v2573_v43 }
 0x2bc   : > { %2025 = vmatpush1.bf16.msra.mxu0 %v2002_v48  ;;  %2723 = vmatprep.mubr.msk.bf16.mxu1 %vm2791_vm0, %v2790_v3 }
 0x2bd   : > { %2582 = vmatprep.subr.msk.bf16.mxu0 %vm1486_vm3, %v2103_v4  ;;  %2727 = vmatprep.subr.bf16.mxu1 %v2790_v3  ;;  %v2311_v0 = vpop.permute.xlu1 %2310  ;;  %v2313_v1 = vpop.permute.xlu0 %2312 }
 0x2be   : > { %2042 = vmatprep.mubr.bf16.mxu0 %v2792_v6  ;;  %v2315_v9 = vsel %vm1292_vm10, %v2311_v0, %v2313_v1  ;;  %v2314_v63 = vsel %vm1292_vm10, %v2309_v57, %v2311_v0  ;;  %v2326_v11 = vsel %vm1486_vm3, %v2313_v1, 0 }
 0x2bf   : > { %v2320_v10 = vsel %vm1486_vm3, %v2314_v63, 0 }
 0x2c2   : > { %2724 = vmatmul.mubr.msk.bf16.vlgmr.msra.gmra.mxu1 %vm1482_vm11, %v2577_v51 }
 0x2c3   : > { %2728 = vmatpush3.bf16.msra.mxu1 %v2114_v54  ;;  %2579 = vmatmul.mubr.msk.bf16.vlgmr.msra.gmra.mxu0 %vm1482_vm11, %v2577_v51 }
 0x2c4   : > { %2131 = vmatpush1.bf16.msra.mxu0 %v2108_v55  ;;  %2729 = vmatprep.mubr.msk.bf16.mxu1 %vm2791_vm0, %v2790_v3 }
 0x2c5   : > { %2586 = vmatprep.subr.msk.bf16.mxu0 %vm1486_vm3, %v2209_v59  ;;  %2733 = vmatprep.subr.bf16.mxu1 %v2790_v3 }
 0x2c6   : > { %2148 = vmatprep.mubr.bf16.mxu0 %v2792_v6 }
 0x2ca   : > { %2730 = vmatmul.mubr.msk.bf16.vlgmr.msra.gmra.mxu1 %vm1482_vm11, %v2581_v61 }
 0x2cb   : > { %2734 = vmatpush3.bf16.msra.mxu1 %v2220_v5  ;;  %2583 = vmatmul.mubr.msk.bf16.vlgmr.msra.gmra.mxu0 %vm1482_vm11, %v2581_v61 }
 0x2cc   : > { %2237 = vmatpush1.bf16.msra.mxu0 %v2214_v8  ;;  %2735 = vmatprep.mubr.msk.bf16.mxu1 %vm2791_vm0, %v2790_v3 }
 0x2cd   : > { %2590 = vmatprep.subr.msk.bf16.mxu0 %vm1486_vm3, %v2315_v9  ;;  %2739 = vmatprep.subr.bf16.mxu1 %v2790_v3 }
 0x2ce   : > { %2254 = vmatprep.mubr.bf16.mxu0 %v2792_v6 }
 0x2d2   : > { %2736 = vmatmul.mubr.msk.bf16.vlgmr.msra.gmra.mxu1 %vm1482_vm11, %v2585_v56 }
 0x2d3   : > { %2740 = vmatpush3.bf16.msra.mxu1 %v2326_v11  ;;  %2587 = vmatmul.mubr.msk.bf16.vlgmr.msra.gmra.mxu0 %vm1482_vm11, %v2585_v56 }
 0x2d4   : > { %2343 = vmatpush1.bf16.msra.mxu0 %v2320_v10  ;;  %2741 = vmatprep.mubr.msk.bf16.mxu1 %vm2791_vm0, %v2790_v3  ;;  %vm2441_vm0 = vcmask 551936  }
 0x2d5   : > { %2360 = vmatprep.mubr.bf16.mxu0 %v2792_v6 }
 0x2da   : > { %2742 = vmatmul.mubr.msk.bf16.vlgmr.msra.gmra.mxu1 %vm1482_vm11, %v2589_v12 }
 0x2db   : > { %2591 = vmatmul.mubr.msk.bf16.vlgmr.msra.gmra.mxu0 %vm1482_vm11, %v2589_v12 }
 0x35a   : > { %v1571_v58 = vpop.f32.mrf.mxu1 }
 0x35b   : > { %v1530_v2 = vpop.f32.mrf.mxu0 }
 0x35c   : > { %v2695_v14 = vpop.f32.mrf.mxu1 }
 0x35d   : > { %v1532_v16 = vpop.f32.mrf.mxu0 }
 0x35e   : > { %v1574_v60 = vpop.f32.mrf.mxu1 }
 0x35f   : > { %v1534_v7 = vpop.f32.mrf.mxu0 }
 0x360   : > { %v2696_v13 = vpop.f32.mrf.mxu1 }
 0x361   : > { %v1535_v17 = vpop.f32.mrf.mxu0 }
 0x362   : > { %v1664_v15 = vpop.f32.mrf.mxu1 }
 0x363   : > { %v1623_v3 = vpop.f32.mrf.mxu0  ;;  %v1665_v0 = vadd.f32 %v1664_v15, %v1571_v58 }
 0x364   : > { %v2701_v18 = vpop.f32.mrf.mxu1  ;;  %v1624_v5 = vadd.f32 %v1623_v3, %v1530_v2 }
 0x365   : > { %v1625_v6 = vpop.f32.mrf.mxu0 }
 0x366   : > { %v1667_v19 = vpop.f32.mrf.mxu1  ;;  %v1626_v63 = vadd.f32 %v1625_v6, %v1532_v16 }
 0x367   : > { %v1627_v20 = vpop.f32.mrf.mxu0 }
 0x368   : > { %v2702_v21 = vpop.f32.mrf.mxu1 }
 0x369   : > { %v1628_v22 = vpop.f32.mrf.mxu0 }
 0x36a   : > { %v1767_v23 = vpop.f32.mrf.mxu1 }
 0x36b   : > { %v1726_v24 = vpop.f32.mrf.mxu0  ;;  %v1775_v9 = vadd.f32 %v1767_v23, %v1665_v0 }
 0x36c   : > { %v2707_v25 = vpop.f32.mrf.mxu1  ;;  %v1773_v11 = vadd.f32 %v1726_v24, %v1624_v5 }
 0x36d   : > { %v1728_v26 = vpop.f32.mrf.mxu0 }
 0x36e   : > { %v1770_v27 = vpop.f32.mrf.mxu1  ;;  %v1774_v60 = vadd.f32 %v1728_v26, %v1626_v63 }
 0x36f   : > { %v1730_v28 = vpop.f32.mrf.mxu0 }
 0x370   : > { %v2708_v29 = vpop.f32.mrf.mxu1 }
 0x371   : > { %v1731_v30 = vpop.f32.mrf.mxu0 }
 0x372   : > { %v1873_v31 = vpop.f32.mrf.mxu1 }
 0x373   : > { %v1832_v33 = vpop.f32.mrf.mxu0  ;;  %v1881_v12 = vadd.f32 %v1873_v31, %v1775_v9 }
 0x374   : > { %v2713_v34 = vpop.f32.mrf.mxu1  ;;  %v1879_v7 = vadd.f32 %v1832_v33, %v1773_v11 }
 0x375   : > { %v1834_v35 = vpop.f32.mrf.mxu0  ;;  %v2416_v34 = vpop.permute.xlu1 %2415 }
 0x376   : > { %v1876_v36 = vpop.f32.mrf.mxu1  ;;  %v1880_v19 = vadd.f32 %v1834_v35, %v1774_v60 }
 0x377   : > { %v1836_v37 = vpop.f32.mrf.mxu0 }
 0x378   : > { %v2714_v38 = vpop.f32.mrf.mxu1 }
 0x379   : > { %v1837_v39 = vpop.f32.mrf.mxu0 }
 0x37a   : > { %v1979_v40 = vpop.f32.mrf.mxu1 }
 0x37b   : > { %v1938_v41 = vpop.f32.mrf.mxu0  ;;  %v1987_v17 = vadd.f32 %v1979_v40, %v1881_v12 }
 0x37c   : > { %v2719_v42 = vpop.f32.mrf.mxu1  ;;  %v1985_v20 = vadd.f32 %v1938_v41, %v1879_v7 }
 0x37d   : > { %v1940_v43 = vpop.f32.mrf.mxu0 }
 0x37e   : > { %v1982_v44 = vpop.f32.mrf.mxu1  ;;  %v1986_v15 = vadd.f32 %v1940_v43, %v1880_v19 }
 0x37f   : > { %v1942_v47 = vpop.f32.mrf.mxu0 }
 0x380   : > { %v2720_v48 = vpop.f32.mrf.mxu1 }
 0x381   : > { %v1943_v49 = vpop.f32.mrf.mxu0 }
 0x382   : > { %v2085_v4 = vpop.f32.mrf.mxu1 }
 0x383   : > { %v2044_v50 = vpop.f32.mrf.mxu0  ;;  %v2093_v22 = vadd.f32 %v2085_v4, %v1987_v17 }
 0x384   : > { %v2725_v51 = vpop.f32.mrf.mxu1  ;;  %v2091_v2 = vadd.f32 %v2044_v50, %v1985_v20 }
 0x385   : > { %v2046_v52 = vpop.f32.mrf.mxu0 }
 0x386   : > { %v2088_v53 = vpop.f32.mrf.mxu1  ;;  %v2092_v16 = vadd.f32 %v2046_v52, %v1986_v15 }
 0x387   : > { %v2048_v54 = vpop.f32.mrf.mxu0 }
 0x388   : > { %v2726_v55 = vpop.f32.mrf.mxu1 }
 0x389   : > { %v2049_v57 = vpop.f32.mrf.mxu0 }
 0x38a   : > { %v2191_v59 = vpop.f32.mrf.mxu1 }
 0x38b   : > { %v2150_v61 = vpop.f32.mrf.mxu0  ;;  %v2199_v23 = vadd.f32 %v2191_v59, %v2093_v22 }
 0x38c   : > { %v2731_v62 = vpop.f32.mrf.mxu1  ;;  %v2197_v6 = vadd.f32 %v2150_v61, %v2091_v2 }
 0x38d   : > { %v2152_v1 = vpop.f32.mrf.mxu0 }
 0x38e   : > { %v2194_v8 = vpop.f32.mrf.mxu1  ;;  %v2198_v28 = vadd.f32 %v2152_v1, %v2092_v16 }
 0x38f   : > { %v2154_v56 = vpop.f32.mrf.mxu0 }
 0x390   : > { %v2732_v10 = vpop.f32.mrf.mxu1 }
 0x391   : > { %v2155_v14 = vpop.f32.mrf.mxu0 }
 0x392   : > { %v2297_v13 = vpop.f32.mrf.mxu1 }
 0x393   : > { %v2256_v18 = vpop.f32.mrf.mxu0  ;;  %v2305_v27 = vadd.f32 %v2297_v13, %v2199_v23 }
 0x394   : > { %v2737_v21 = vpop.f32.mrf.mxu1  ;;  %v2303_v29 = vadd.f32 %v2256_v18, %v2197_v6 }
 0x395   : > { %v2258_v58 = vpop.f32.mrf.mxu0 }
 0x396   : > { %v2300_v3 = vpop.f32.mrf.mxu1  ;;  %v2304_v35 = vadd.f32 %v2258_v58, %v2198_v28 }
 0x397   : > { %v2260_v25 = vpop.f32.mrf.mxu0 }
 0x398   : > { %v2738_v24 = vpop.f32.mrf.mxu1 }
 0x399   : > { %v2261_v26 = vpop.f32.mrf.mxu0 }
 0x39a   : > { %v2403_v30 = vpop.f32.mrf.mxu1 }
 0x39b   : > { %v2411_v31 = vadd.f32 %v2403_v30, %v2305_v27  ;;  %v2362_v33 = vpop.f32.mrf.mxu0 }
 0x39c   : > { %v2409_v36 = vadd.f32 %v2362_v33, %v2303_v29  ;;  %v2743_v37 = vpop.f32.mrf.mxu1 }
 0x39d   : > { %v2420_v38 = vadd.f32 %v2416_v34, %v2411_v31  ;;  %v2364_v39 = vpop.f32.mrf.mxu0 }
 0x39e   : > { %v2418_v40 = vadd.f32 %v2416_v34, %v2409_v36  ;;  %v2410_v41 = vadd.f32 %v2364_v39, %v2304_v35  ;;  %v2406_v42 = vpop.f32.mrf.mxu1 }
 0x39f   : > { %v2423_v43 = vmax.f32 %v2420_v38, 0.0  ;;  %v2366_v44 = vpop.f32.mrf.mxu0 }
 0x3a0   : > { %v2421_v47 = vmax.f32 %v2418_v40, 0.0  ;;  %v2419_v48 = vadd.f32 %v2416_v34, %v2410_v41  ;;  %v2744_v49 = vpop.f32.mrf.mxu1 }
 0x3a1   : > { %v2426_v4 = vmul.f32 %v2423_v43, %v3068_v32  ;;  %v2367_v50 = vpop.f32.mrf.mxu0 }
 0x3a2   : > { %v2422_v51 = vmax.f32 %v2419_v48, 0.0  ;;  %v2424_v53 = vmul.f32 %v2421_v47, %v3073_v45 }
 0x3a3   : > { %v2600_v52 = vpack.c.bf16 %v2426_v4, %v2426_v4 }
 0x3a4   : > { %v2425_v54 = vmul.f32 %v2422_v51, %v3075_v46 }
 0x3a5   : > { %2442 = vst.msk [vmem:[%s295_s9 + $0x8] sm:$0xf] %vm2441_vm0, %v2600_v52 }
 0x3a6   : > { %v2599_v55 = vpack.c.bf16 %v2425_v54, %v2424_v53 }
 0x3a8   : > { %2440 = vst [vmem:[%s295_s9] sm:$0xff] %v2599_v55 }
 0x3a9 PF: > { %s17_s24 = sadd.s32 1, %s2787_s24  }
 0x3aa   : > { %p14_p4 = scmp.ge.s32.totalorder %s17_s24, 4  }
 0x3ac   :  { %16 = sbr.rel (!%p14_p4) target bundleno = 1 (0x1), region = 97 }

</bundles_post_ra>
